<compile_context>
chip_gen: v6e
topology: v6e:2x2x1
jax: 0.10.0
libtpu: 0.0.40
codegen_flags: <defaults>
</compile_context>

<pallas_src>
import functools

import jax
import jax.numpy as jnp
import numpy as np
from jax import lax
from jax.experimental import pallas as pl
from jax.experimental.pallas import tpu as pltpu

GRAD_IS_ZERO = 1e-12


# --------------------------------------------------------------------------
# roll helper: jnp.roll semantics (out[i] = x[(i - shift) % n]) backed by the
# XLU via pltpu.roll.  Direction convention is verified once by a tiny probe
# kernel; if anything is off we fall back to jnp.roll (always correct).
# --------------------------------------------------------------------------
def _shift(x, shift, axis, mode):
    n = x.shape[axis]
    if n == 1:
        return x
    if mode == "pltpu":
        return pltpu.roll(x, shift % n, axis)
    if mode == "pltpu_flipped":
        return pltpu.roll(x, (-shift) % n, axis)
    return jnp.roll(x, shift, axis)


@functools.lru_cache(maxsize=None)
def _roll_mode(rows, cols):
    """Probe pltpu.roll once per block shape: 'pltpu' | 'pltpu_flipped' | 'jnp'."""
    x_np = np.arange(rows * cols, dtype=np.float32).reshape(rows, cols)

    def probe(x_ref, lane_ref, sub_ref):
        lane_ref[...] = pltpu.roll(x_ref[...], 1, 1)
        sub_ref[...] = pltpu.roll(x_ref[...], 1, 0)

    try:
        lane, sub = pl.pallas_call(
            probe,
            out_shape=(jax.ShapeDtypeStruct((rows, cols), jnp.float32),) * 2,
        )(jnp.asarray(x_np))
        lane = np.asarray(jax.block_until_ready(lane))
        sub = np.asarray(sub)
        if (np.array_equal(lane, np.roll(x_np, 1, 1))
                and np.array_equal(sub, np.roll(x_np, 1, 0))):
            return "pltpu"
        if (np.array_equal(lane, np.roll(x_np, -1, 1))
                and np.array_equal(sub, np.roll(x_np, -1, 0))):
            return "pltpu_flipped"
    except Exception:
        pass
    return "jnp"


# --------------------------------------------------------------------------
# fused kernel: one (TH, Wp) H-tile of one batch image per grid step.
# --------------------------------------------------------------------------
def _iter_block_kernel(
        # 9 main (TH, Wp) tiles
        d2x_ref, d2y_ref, u1_ref, u2_ref, grad_ref,
        p11_ref, p12_ref, p21_ref, p22_ref,
        # 9 "tile below" (8, Wp) halo blocks (row 0 = first row below the tile)
        d2x_b_ref, d2y_b_ref, u1_b_ref, u2_b_ref, grad_b_ref,
        p11_b_ref, p12_b_ref, p21_b_ref, p22_b_ref,
        # 2 "tile above" (8, Wp) halo blocks (row 7 = last row above the tile)
        p12_a_ref, p22_a_ref,
        # 7 outputs (TH, Wp)
        p11_o, p12_o, p21_o, p22_o, rho_o, u1_o, u2_o,
        *, l_t, taut, theta, rho_c, true_h, true_w, tile_h, roll_mode):
    H, W, TH = true_h, true_w, tile_h
    row_start = pl.program_id(1) * TH

    shift = lambda x, s, ax: _shift(x, s, ax, roll_mode)

    def div_x(px, colv):
        # Backward difference along W with Div's boundary handling:
        # dx[0]=px[0], dx[w]=px[w]-px[w-1], dx[W-1]=-px[W-2].
        return (jnp.where(colv == W - 1, 0.0, px)
                - jnp.where(colv == 0, 0.0, shift(px, 1, 1)))

    def v_terms(d2x, d2y, u1, u2, grad):
        rho = rho_c + d2x * u1 + d2y * u2 + GRAD_IS_ZERO
        lt_g = l_t * grad
        m1 = rho < -lt_g
        m2 = rho > lt_g
        m3 = jnp.logical_and(
            jnp.logical_and(jnp.logical_not(m1), jnp.logical_not(m2)),
            grad > GRAD_IS_ZERO)
        z = jnp.zeros_like(d2x)
        ratio = -rho / jnp.maximum(grad, GRAD_IS_ZERO)  # safe; only used under m3
        d1 = (jnp.where(m1, l_t * d2x, z) + jnp.where(m2, -l_t * d2x, z)
              + jnp.where(m3, ratio * d2x, z))
        d2 = (jnp.where(m1, l_t * d2y, z) + jnp.where(m2, -l_t * d2y, z)
              + jnp.where(m3, ratio * d2y, z))
        return rho, d1 + u1, d2 + u2

    d2x = d2x_ref[...]
    d2y = d2y_ref[...]
    u1 = u1_ref[...]
    u2 = u2_ref[...]
    grad = grad_ref[...]
    p11 = p11_ref[...]
    p12 = p12_ref[...]
    p21 = p21_ref[...]
    p22 = p22_ref[...]
    shape = d2x.shape                                   # (TH, Wp)

    lrow = lax.broadcasted_iota(jnp.int32, shape, 0)
    col = lax.broadcasted_iota(jnp.int32, shape, 1)
    grow = lrow + row_start                             # global row index
    row_first = grow == 0
    row_last = grow == H - 1

    # ---- u_new on the tile rows -------------------------------------------
    rho, v1, v2 = v_terms(d2x, d2y, u1, u2, grad)
    # previous row of p12/p22 (halo-above supplies the row before the tile;
    # its value is irrelevant when grow==0 because that term is masked).
    p12_up = jnp.where(lrow == 0, p12_a_ref[7:8, :], shift(p12, 1, 0))
    p22_up = jnp.where(lrow == 0, p22_a_ref[7:8, :], shift(p22, 1, 0))

    def div_y(py, py_up):
        return jnp.where(row_last, 0.0, py) - jnp.where(row_first, 0.0, py_up)

    u1_new = v1 + theta * (div_x(p11, col) + div_y(p12, p12_up))
    u2_new = v2 + theta * (div_x(p21, col) + div_y(p22, p22_up))

    # ---- u_new on the single row just below the tile ------------------------
    # (needed by the forward y-gradient of the tile's last row; recomputed from
    # the 8-row halo blocks, only row 0 of the result is meaningful).
    bshape = d2x_b_ref.shape                            # (8, Wp)
    col_b = lax.broadcasted_iota(jnp.int32, bshape, 1)
    gb = row_start + TH                                 # global row of halo row 0 (> 0)
    _, v1_b, v2_b = v_terms(d2x_b_ref[...], d2y_b_ref[...], u1_b_ref[...],
                            u2_b_ref[...], grad_b_ref[...])
    b_last = gb == H - 1
    divy1_b = jnp.where(b_last, 0.0, p12_b_ref[...]) - p12[TH - 1:TH, :]
    divy2_b = jnp.where(b_last, 0.0, p22_b_ref[...]) - p22[TH - 1:TH, :]
    u1_new_b = (v1_b + theta * (div_x(p11_b_ref[...], col_b) + divy1_b))[0:1, :]
    u2_new_b = (v2_b + theta * (div_x(p21_b_ref[...], col_b) + divy2_b))[0:1, :]

    # ---- forward gradients of u_new -----------------------------------------
    u1_next = jnp.where(lrow == TH - 1, u1_new_b, shift(u1_new, -1, 0))
    u2_next = jnp.where(lrow == TH - 1, u2_new_b, shift(u2_new, -1, 0))
    u1x = jnp.where(col == W - 1, 0.0, shift(u1_new, -1, 1) - u1_new)
    u2x = jnp.where(col == W - 1, 0.0, shift(u2_new, -1, 1) - u2_new)
    u1y = jnp.where(row_last, 0.0, u1_next - u1_new)
    u2y = jnp.where(row_last, 0.0, u2_next - u2_new)

    # ---- dual-variable update: 2 reciprocals + 4 muls instead of 4 divides ---
    ng1 = jnp.sqrt(u1x * u1x + u1y * u1y + GRAD_IS_ZERO)
    ng2 = jnp.sqrt(u2x * u2x + u2y * u2y + GRAD_IS_ZERO)
    inv1 = pl.reciprocal(1.0 + taut * ng1)
    inv2 = pl.reciprocal(1.0 + taut * ng2)
    p11_o[...] = (p11 + taut * u1x) * inv1
    p12_o[...] = (p12 + taut * u1y) * inv1
    p21_o[...] = (p21 + taut * u2x) * inv2
    p22_o[...] = (p22 + taut * u2y) * inv2
    rho_o[...] = rho
    u1_o[...] = u1_new
    u2_o[...] = u2_new


# --------------------------------------------------------------------------
# wrapper
# --------------------------------------------------------------------------
def _choose_tile_h(h, w_padded):
    """H-tile (multiple of 8) keeping resident VMEM well under v7x's 64 MiB."""
    budget = 32 * 1024 * 1024
    # 16 TH-row I/O blocks x 2 buffers + ~16 full-tile temporaries, f32.
    bytes_per_row = (2 * 16 + 16) * w_padded * 4
    th = budget // max(bytes_per_row, 1)
    th = int(max(8, min(256, (th // 8) * 8)))
    h8 = ((h + 7) // 8) * 8
    return min(th, h8)


def iter_block(diff2_x_warp, diff2_y_warp, u1, u2, grad,
               p11, p12, p21, p22, rho_c=0.0,
               *, l_t=0.045, taut=2.5, theta=0.3, tile_h=None):
    """JAX/Pallas equivalent of IterBlock.forward.

    diff2_x_warp, diff2_y_warp, grad, p11, p12, p21, p22: [N, 1, H, W]
    u1, u2: [N, H, W]
    Returns (p11, p12, p21, p22, rho, u1, u2); p*/rho are NCHW, u1/u2 are NHW.
    """
    N, C, H, W = diff2_x_warp.shape
    assert C == 1
    Wp = ((W + 127) // 128) * 128                      # lane-dense last dim
    h8 = ((H + 7) // 8) * 8
    if tile_h is None:
        TH = _choose_tile_h(H, Wp)
    else:
        TH = min(max(8, (int(tile_h) // 8) * 8), h8)
    Hp = ((H + TH - 1) // TH) * TH
    n_h = Hp // TH
    thb, nhb = TH // 8, Hp // 8

    def prep(a):
        a = jnp.asarray(a, jnp.float32).reshape(N, H, W)
        if (Hp, Wp) != (H, W):
            a = jnp.pad(a, ((0, 0), (0, Hp - H), (0, Wp - W)))
        return a

    main = [prep(a) for a in (diff2_x_warp, diff2_y_warp, u1, u2, grad,
                              p11, p12, p21, p22)]

    tile_spec = pl.BlockSpec((None, TH, Wp), lambda n, h: (n, h, 0))
    below_spec = pl.BlockSpec(
        (None, 8, Wp), lambda n, h: (n, jnp.minimum((h + 1) * thb, nhb - 1), 0))
    above_spec = pl.BlockSpec(
        (None, 8, Wp), lambda n, h: (n, jnp.maximum(h * thb - 1, 0), 0))

    roll_mode = _roll_mode(TH, Wp)

    kernel = functools.partial(
        _iter_block_kernel, l_t=float(l_t), taut=float(taut),
        theta=float(theta), rho_c=float(rho_c), true_h=H, true_w=W,
        tile_h=TH, roll_mode=roll_mode)

    out_sds = jax.ShapeDtypeStruct((N, Hp, Wp), jnp.float32)
    outs = pl.pallas_call(
        kernel,
        grid=(N, n_h),
        in_specs=[tile_spec] * 9 + [below_spec] * 9 + [above_spec] * 2,
        out_specs=[tile_spec] * 7,
        out_shape=(out_sds,) * 7,
        compiler_params=pltpu.CompilerParams(
            dimension_semantics=("parallel", "parallel"),
            vmem_limit_bytes=48 * 1024 * 1024),
    )(*main, *main, main[6], main[8])      # halo-above only needed for p12, p22

    p11o, p12o, p21o, p22o, rho, u1o, u2o = outs
    crop = lambda a: a[:, :H, :W]
    nchw = lambda a: crop(a)[:, None, :, :]
    return (nchw(p11o), nchw(p12o), nchw(p21o), nchw(p22o), nchw(rho),
            crop(u1o), crop(u2o))


# --------------------------------------------------------------------------
# pure-JAX reference (mirrors the PyTorch module) for correctness checking
# --------------------------------------------------------------------------
def _ref_divergence(px, py):
    zc = jnp.zeros_like(px[:, :, :1])
    xext = jnp.concatenate([zc, px[:, :, :-1], zc], axis=2)
    dx = xext[:, :, 1:] - xext[:, :, :-1]
    zr = jnp.zeros_like(py[:, :1, :])
    yext = jnp.concatenate([zr, py[:, :-1, :], zr], axis=1)
    dy = yext[:, 1:, :] - yext[:, :-1, :]
    return dx + dy


def _ref_forward_grad(u):
    zc = jnp.zeros_like(u[:, :, :1])
    ux = jnp.concatenate([u[:, :, 1:] - u[:, :, :-1], zc], axis=2)
    zr = jnp.zeros_like(u[:, :1, :])
    uy = jnp.concatenate([u[:, 1:, :] - u[:, :-1, :], zr], axis=1)
    return ux, uy


def _ref_iter_block(d2x, d2y, u1, u2, grad, p11, p12, p21, p22, rho_c=0.0,
                    l_t=0.045, taut=2.5, theta=0.3):
    s = lambda a: a[:, 0]
    d2x, d2y, grad = s(d2x), s(d2y), s(grad)
    p11, p12, p21, p22 = s(p11), s(p12), s(p21), s(p22)
    rho = rho_c + d2x * u1 + d2y * u2 + GRAD_IS_ZERO
    m1 = rho < -l_t * grad
    m2 = rho > l_t * grad
    m3 = (~m1) & (~m2) & (grad > GRAD_IS_ZERO)
    z = jnp.zeros_like(d2x)
    ratio = -rho / jnp.maximum(grad, GRAD_IS_ZERO)
    d1 = (jnp.where(m1, l_t * d2x, z) + jnp.where(m2, -l_t * d2x, z)
          + jnp.where(m3, ratio * d2x, z))
    d2 = (jnp.where(m1, l_t * d2y, z) + jnp.where(m2, -l_t * d2y, z)
          + jnp.where(m3, ratio * d2y, z))
    v1, v2 = d1 + u1, d2 + u2
    u1n = v1 + theta * _ref_divergence(p11, p12)
    u2n = v2 + theta * _ref_divergence(p21, p22)
    u1x, u1y = _ref_forward_grad(u1n)
    u2x, u2y = _ref_forward_grad(u2n)
    den1 = 1.0 + taut * jnp.sqrt(u1x ** 2 + u1y ** 2 + GRAD_IS_ZERO)
    den2 = 1.0 + taut * jnp.sqrt(u2x ** 2 + u2y ** 2 + GRAD_IS_ZERO)
    e = lambda a: a[:, None]
    return (e((p11 + taut * u1x) / den1), e((p12 + taut * u1y) / den1),
            e((p21 + taut * u2x) / den2), e((p22 + taut * u2y) / den2),
            e(rho), u1n, u2n)


if __name__ == "__main__":
    def make_inputs(key, N, H, W):
        ks = jax.random.split(key, 8)
        nchw = lambda k: jax.random.normal(k, (N, 1, H, W), jnp.float32)
        d2x, d2y = nchw(ks[0]), nchw(ks[1])
        grad = d2x ** 2 + d2y ** 2              # >= 0, like |grad|^2 in TV-L1
        u1 = jax.random.normal(ks[2], (N, H, W), jnp.float32)
        u2 = jax.random.normal(ks[3], (N, H, W), jnp.float32)
        return (d2x, d2y, u1, u2, grad,
                nchw(ks[4]), nchw(ks[5]), nchw(ks[6]), nchw(ks[7]))

    key = jax.random.PRNGKey(0)
    k1, k2 = jax.random.split(key)

    # config 1: two H-tiles (exercises halo seams) + W padded 16 -> 128.
    # config 2: H not a multiple of the tile (exercises H padding + clamped halos).
    for (k, N, H, W, th) in ((k1, 2, 16, 16, 8), (k2, 1, 12, 16, 8)):
        args = make_inputs(k, N, H, W)
        outs = jax.block_until_ready(iter_block(*args, tile_h=th))
        refs = _ref_iter_block(*args)
        for o, r in zip(outs, refs):
            np.testing.assert_allclose(np.asarray(o), np.asarray(r),
                                       rtol=1e-5, atol=1e-5)

    print("KERNEL_OK")
</pallas_src>

<mosaic_0001>
module attributes {stable_mosaic.version = 11 : i64} {
  func.func @probe(%arg0: memref<8x128xf32, #tpu.memory_space<vmem>>, %arg1: memref<8x128xf32, #tpu.memory_space<vmem>>, %arg2: memref<8x128xf32, #tpu.memory_space<vmem>>) attributes {dimension_semantics = [], scalar_prefetch = 0 : i64, scratch_operands = 0 : i64, tpu.core_type = #tpu.core_type<tc>} {
    %c0 = arith.constant 0 : index
    %c0_0 = arith.constant 0 : index
    %0 = vector.load %arg0[%c0, %c0_0] : memref<8x128xf32, #tpu.memory_space<vmem>>, vector<8x128xf32>
    %c1_i32 = arith.constant 1 : i32
    %1 = tpu.dynamic_rotate %0 by %c1_i32 dim 1 : vector<8x128xf32>, i32 -> vector<8x128xf32>
    %c0_1 = arith.constant 0 : index
    %c0_2 = arith.constant 0 : index
    %2 = vector.load %arg1[%c0_1, %c0_2] : memref<8x128xf32, #tpu.memory_space<vmem>>, vector<8x128xf32>
    tpu.vector_store %arg1[%c0_1, %c0_2], %1 {strides = array<i32>} : memref<8x128xf32, #tpu.memory_space<vmem>>, vector<8x128xf32>,
    %c0_3 = arith.constant 0 : index
    %c0_4 = arith.constant 0 : index
    %3 = vector.load %arg0[%c0_3, %c0_4] : memref<8x128xf32, #tpu.memory_space<vmem>>, vector<8x128xf32>
    %c1_i32_5 = arith.constant 1 : i32
    %4 = tpu.dynamic_rotate %3 by %c1_i32_5 dim 0 : vector<8x128xf32>, i32 -> vector<8x128xf32>
    %c0_6 = arith.constant 0 : index
    %c0_7 = arith.constant 0 : index
    %5 = vector.load %arg2[%c0_6, %c0_7] : memref<8x128xf32, #tpu.memory_space<vmem>>, vector<8x128xf32>
    tpu.vector_store %arg2[%c0_6, %c0_7], %4 {strides = array<i32>} : memref<8x128xf32, #tpu.memory_space<vmem>>, vector<8x128xf32>,
    return
  }
}

module attributes {stable_mosaic.version = 11 : i64} {
  func.func @_iter_block_kernel(%arg0: i32, %arg1: i32, %arg2: memref<1x8x128xf32, #tpu.memory_space<vmem>>, %arg3: memref<1x8x128xf32, #tpu.memory_space<vmem>>, %arg4: memref<1x8x128xf32, #tpu.memory_space<vmem>>, %arg5: memref<1x8x128xf32, #tpu.memory_space<vmem>>, %arg6: memref<1x8x128xf32, #tpu.memory_space<vmem>>, %arg7: memref<1x8x128xf32, #tpu.memory_space<vmem>>, %arg8: memref<1x8x128xf32, #tpu.memory_space<vmem>>, %arg9: memref<1x8x128xf32, #tpu.memory_space<vmem>>, %arg10: memref<1x8x128xf32, #tpu.memory_space<vmem>>, %arg11: memref<1x8x128xf32, #tpu.memory_space<vmem>>, %arg12: memref<1x8x128xf32, #tpu.memory_space<vmem>>, %arg13: memref<1x8x128xf32, #tpu.memory_space<vmem>>, %arg14: memref<1x8x128xf32, #tpu.memory_space<vmem>>, %arg15: memref<1x8x128xf32, #tpu.memory_space<vmem>>, %arg16: memref<1x8x128xf32, #tpu.memory_space<vmem>>, %arg17: memref<1x8x128xf32, #tpu.memory_space<vmem>>, %arg18: memref<1x8x128xf32, #tpu.memory_space<vmem>>, %arg19: memref<1x8x128xf32, #tpu.memory_space<vmem>>, %arg20: memref<1x8x128xf32, #tpu.memory_space<vmem>>, %arg21: memref<1x8x128xf32, #tpu.memory_space<vmem>>, %arg22: memref<1x8x128xf32, #tpu.memory_space<vmem>>, %arg23: memref<1x8x128xf32, #tpu.memory_space<vmem>>, %arg24: memref<1x8x128xf32, #tpu.memory_space<vmem>>, %arg25: memref<1x8x128xf32, #tpu.memory_space<vmem>>, %arg26: memref<1x8x128xf32, #tpu.memory_space<vmem>>, %arg27: memref<1x8x128xf32, #tpu.memory_space<vmem>>, %arg28: memref<1x8x128xf32, #tpu.memory_space<vmem>>) attributes {dimension_semantics = [#tpu.dimension_semantics<parallel>, #tpu.dimension_semantics<parallel>], iteration_bounds = array<i64: 2, 2>, scalar_prefetch = 0 : i64, scratch_operands = 0 : i64, tpu.core_type = #tpu.core_type<tc>, window_params = [{transform_indices = @transform_0, window_bounds = array<i64: 1, 8, 128>}, {transform_indices = @transform_1, window_bounds = array<i64: 1, 8, 128>}, {transform_indices = @transform_2, window_bounds = array<i64: 1, 8, 128>}, {transform_indices = @transform_3, window_bounds = array<i64: 1, 8, 128>}, {transform_indices = @transform_4, window_bounds = array<i64: 1, 8, 128>}, {transform_indices = @transform_5, window_bounds = array<i64: 1, 8, 128>}, {transform_indices = @transform_6, window_bounds = array<i64: 1, 8, 128>}, {transform_indices = @transform_7, window_bounds = array<i64: 1, 8, 128>}, {transform_indices = @transform_8, window_bounds = array<i64: 1, 8, 128>}, {transform_indices = @transform_9, window_bounds = array<i64: 1, 8, 128>}, {transform_indices = @transform_10, window_bounds = array<i64: 1, 8, 128>}, {transform_indices = @transform_11, window_bounds = array<i64: 1, 8, 128>}, {transform_indices = @transform_12, window_bounds = array<i64: 1, 8, 128>}, {transform_indices = @transform_13, window_bounds = array<i64: 1, 8, 128>}, {transform_indices = @transform_14, window_bounds = array<i64: 1, 8, 128>}, {transform_indices = @transform_15, window_bounds = array<i64: 1, 8, 128>}, {transform_indices = @transform_16, window_bounds = array<i64: 1, 8, 128>}, {transform_indices = @transform_17, window_bounds = array<i64: 1, 8, 128>}, {transform_indices = @transform_18, window_bounds = array<i64: 1, 8, 128>}, {transform_indices = @transform_19, window_bounds = array<i64: 1, 8, 128>}, {transform_indices = @transform_20, window_bounds = array<i64: 1, 8, 128>}, {transform_indices = @transform_21, window_bounds = array<i64: 1, 8, 128>}, {transform_indices = @transform_22, window_bounds = array<i64: 1, 8, 128>}, {transform_indices = @transform_23, window_bounds = array<i64: 1, 8, 128>}, {transform_indices = @transform_24, window_bounds = array<i64: 1, 8, 128>}, {transform_indices = @transform_25, window_bounds = array<i64: 1, 8, 128>}, {transform_indices = @transform_26, window_bounds = array<i64: 1, 8, 128>}]} {
    %c8_i32 = arith.constant 8 : i32
    %0 = arith.muli %arg1, %c8_i32 : i32
    %c0 = arith.constant 0 : index
    %c0_0 = arith.constant 0 : index
    %c0_1 = arith.constant 0 : index
    %1 = vector.load %arg2[%c0, %c0_0, %c0_1] : memref<1x8x128xf32, #tpu.memory_space<vmem>>, vector<1x8x128xf32>
    %2 = vector.shape_cast %1 : vector<1x8x128xf32> to vector<8x128xf32>
    %c0_2 = arith.constant 0 : index
    %c0_3 = arith.constant 0 : index
    %c0_4 = arith.constant 0 : index
    %3 = vector.load %arg3[%c0_2, %c0_3, %c0_4] : memref<1x8x128xf32, #tpu.memory_space<vmem>>, vector<1x8x128xf32>
    %4 = vector.shape_cast %3 : vector<1x8x128xf32> to vector<8x128xf32>
    %c0_5 = arith.constant 0 : index
    %c0_6 = arith.constant 0 : index
    %c0_7 = arith.constant 0 : index
    %5 = vector.load %arg4[%c0_5, %c0_6, %c0_7] : memref<1x8x128xf32, #tpu.memory_space<vmem>>, vector<1x8x128xf32>
    %6 = vector.shape_cast %5 : vector<1x8x128xf32> to vector<8x128xf32>
    %c0_8 = arith.constant 0 : index
    %c0_9 = arith.constant 0 : index
    %c0_10 = arith.constant 0 : index
    %7 = vector.load %arg5[%c0_8, %c0_9, %c0_10] : memref<1x8x128xf32, #tpu.memory_space<vmem>>, vector<1x8x128xf32>
    %8 = vector.shape_cast %7 : vector<1x8x128xf32> to vector<8x128xf32>
    %c0_11 = arith.constant 0 : index
    %c0_12 = arith.constant 0 : index
    %c0_13 = arith.constant 0 : index
    %9 = vector.load %arg6[%c0_11, %c0_12, %c0_13] : memref<1x8x128xf32, #tpu.memory_space<vmem>>, vector<1x8x128xf32>
    %10 = vector.shape_cast %9 : vector<1x8x128xf32> to vector<8x128xf32>
    %c0_14 = arith.constant 0 : index
    %c0_15 = arith.constant 0 : index
    %c0_16 = arith.constant 0 : index
    %11 = vector.load %arg7[%c0_14, %c0_15, %c0_16] : memref<1x8x128xf32, #tpu.memory_space<vmem>>, vector<1x8x128xf32>
    %12 = vector.shape_cast %11 : vector<1x8x128xf32> to vector<8x128xf32>
    %c0_17 = arith.constant 0 : index
    %c0_18 = arith.constant 0 : index
    %c0_19 = arith.constant 0 : index
    %13 = vector.load %arg8[%c0_17, %c0_18, %c0_19] : memref<1x8x128xf32, #tpu.memory_space<vmem>>, vector<1x8x128xf32>
    %14 = vector.shape_cast %13 : vector<1x8x128xf32> to vector<8x128xf32>
    %c0_20 = arith.constant 0 : index
    %c0_21 = arith.constant 0 : index
    %c0_22 = arith.constant 0 : index
    %15 = vector.load %arg9[%c0_20, %c0_21, %c0_22] : memref<1x8x128xf32, #tpu.memory_space<vmem>>, vector<1x8x128xf32>
    %16 = vector.shape_cast %15 : vector<1x8x128xf32> to vector<8x128xf32>
    %c0_23 = arith.constant 0 : index
    %c0_24 = arith.constant 0 : index
    %c0_25 = arith.constant 0 : index
    %17 = vector.load %arg10[%c0_23, %c0_24, %c0_25] : memref<1x8x128xf32, #tpu.memory_space<vmem>>, vector<1x8x128xf32>
    %18 = vector.shape_cast %17 : vector<1x8x128xf32> to vector<8x128xf32>
    %19 = tpu.iota {dimensions = array<i32: 0>} : vector<8x128xi32>
    %20 = tpu.iota {dimensions = array<i32: 1>} : vector<8x128xi32>
    %21 = vector.broadcast %0 : i32 to vector<8x128xi32>
    %22 = arith.addi %19, %21 : vector<8x128xi32>
    %c0_i32 = arith.constant 0 : i32
    %23 = vector.broadcast %c0_i32 : i32 to vector<8x128xi32>
    %24 = arith.cmpi eq, %22, %23 : vector<8x128xi32>
    %c15_i32 = arith.constant 15 : i32
    %25 = vector.broadcast %c15_i32 : i32 to vector<8x128xi32>
    %26 = arith.cmpi eq, %22, %25 : vector<8x128xi32>
    %27 = arith.mulf %2, %6 : vector<8x128xf32>
    %cst = arith.constant 0.000000e+00 : f32
    %28 = vector.broadcast %cst : f32 to vector<8x128xf32>
    %29 = arith.addf %28, %27 : vector<8x128xf32>
    %30 = arith.mulf %4, %8 : vector<8x128xf32>
    %31 = arith.addf %29, %30 : vector<8x128xf32>
    %cst_26 = arith.constant 9.99999996E-13 : f32
    %32 = vector.broadcast %cst_26 : f32 to vector<8x128xf32>
    %33 = arith.addf %31, %32 : vector<8x128xf32>
    %cst_27 = arith.constant 4.500000e-02 : f32
    %34 = vector.broadcast %cst_27 : f32 to vector<8x128xf32>
    %35 = arith.mulf %34, %10 : vector<8x128xf32>
    %cst_28 = arith.constant 0.000000e+00 : f32
    %36 = vector.broadcast %cst_28 : f32 to vector<8x128xf32>
    %37 = arith.subf %36, %35 : vector<8x128xf32>
    %38 = arith.cmpf olt, %33, %37 : vector<8x128xf32>
    %39 = arith.cmpf ogt, %33, %35 : vector<8x128xf32>
    %cst_29 = arith.constant dense<true> : vector<8x128xi1>
    %40 = arith.xori %38, %cst_29 : vector<8x128xi1>
    %cst_30 = arith.constant dense<true> : vector<8x128xi1>
    %41 = arith.xori %39, %cst_30 : vector<8x128xi1>
    %42 = arith.andi %40, %41 : vector<8x128xi1>
    %cst_31 = arith.constant 9.99999996E-13 : f32
    %43 = vector.broadcast %cst_31 : f32 to vector<8x128xf32>
    %44 = arith.cmpf ogt, %10, %43 : vector<8x128xf32>
    %45 = arith.andi %42, %44 : vector<8x128xi1>
    %cst_32 = arith.constant 0.000000e+00 : f32
    %46 = vector.broadcast %cst_32 : f32 to vector<8x128xf32>
    %cst_33 = arith.constant 0.000000e+00 : f32
    %47 = vector.broadcast %cst_33 : f32 to vector<8x128xf32>
    %48 = arith.subf %47, %33 : vector<8x128xf32>
    %cst_34 = arith.constant 9.99999996E-13 : f32
    %49 = vector.broadcast %cst_34 : f32 to vector<8x128xf32>
    %50 = arith.maximumf %10, %49 : vector<8x128xf32>
    %51 = arith.divf %48, %50 : vector<8x128xf32>
    %cst_35 = arith.constant 4.500000e-02 : f32
    %52 = vector.broadcast %cst_35 : f32 to vector<8x128xf32>
    %53 = arith.mulf %52, %2 : vector<8x128xf32>
    %54 = arith.select %38, %53, %46 : vector<8x128xi1>, vector<8x128xf32>
    %cst_36 = arith.constant -4.500000e-02 : f32
    %55 = vector.broadcast %cst_36 : f32 to vector<8x128xf32>
    %56 = arith.mulf %55, %2 : vector<8x128xf32>
    %57 = arith.select %39, %56, %46 : vector<8x128xi1>, vector<8x128xf32>
    %58 = arith.addf %54, %57 : vector<8x128xf32>
    %59 = arith.mulf %51, %2 : vector<8x128xf32>
    %60 = arith.select %45, %59, %46 : vector<8x128xi1>, vector<8x128xf32>
    %61 = arith.addf %58, %60 : vector<8x128xf32>
    %cst_37 = arith.constant 4.500000e-02 : f32
    %62 = vector.broadcast %cst_37 : f32 to vector<8x128xf32>
    %63 = arith.mulf %62, %4 : vector<8x128xf32>
    %64 = arith.select %38, %63, %46 : vector<8x128xi1>, vector<8x128xf32>
    %cst_38 = arith.constant -4.500000e-02 : f32
    %65 = vector.broadcast %cst_38 : f32 to vector<8x128xf32>
    %66 = arith.mulf %65, %4 : vector<8x128xf32>
    %67 = arith.select %39, %66, %46 : vector<8x128xi1>, vector<8x128xf32>
    %68 = arith.addf %64, %67 : vector<8x128xf32>
    %69 = arith.mulf %51, %4 : vector<8x128xf32>
    %70 = arith.select %45, %69, %46 : vector<8x128xi1>, vector<8x128xf32>
    %71 = arith.addf %68, %70 : vector<8x128xf32>
    %72 = arith.addf %61, %6 : vector<8x128xf32>
    %73 = arith.addf %71, %8 : vector<8x128xf32>
    %c0_i32_39 = arith.constant 0 : i32
    %74 = vector.broadcast %c0_i32_39 : i32 to vector<8x128xi32>
    %75 = arith.cmpi eq, %19, %74 : vector<8x128xi32>
    %c0_40 = arith.constant 0 : index
    %c7 = arith.constant 7 : index
    %c0_41 = arith.constant 0 : index
    %76 = vector.load %arg20[%c0_40, %c7, %c0_41] : memref<1x8x128xf32, #tpu.memory_space<vmem>>, vector<1x1x128xf32>
    %77 = vector.shape_cast %76 : vector<1x1x128xf32> to vector<1x128xf32>
    %78 = vector.extract_strided_slice %14 {offsets = [7, 0], sizes = [1, 128], strides = [1, 1]} : vector<8x128xf32> to vector<1x128xf32>
    %79 = vector.extract_strided_slice %14 {offsets = [0, 0], sizes = [7, 128], strides = [1, 1]} : vector<8x128xf32> to vector<7x128xf32>
    %80 = tpu.concatenate %78, %79 in 0 : vector<1x128xf32>, vector<7x128xf32> -> vector<8x128xf32>
    %81 = vector.shape_cast %77 : vector<1x128xf32> to vector<1x128xf32>
    %82 = vector.broadcast %81 : vector<1x128xf32> to vector<8x128xf32>
    %83 = arith.select %75, %82, %80 : vector<8x128xi1>, vector<8x128xf32>
    %c0_i32_42 = arith.constant 0 : i32
    %84 = vector.broadcast %c0_i32_42 : i32 to vector<8x128xi32>
    %85 = arith.cmpi eq, %19, %84 : vector<8x128xi32>
    %c0_43 = arith.constant 0 : index
    %c7_44 = arith.constant 7 : index
    %c0_45 = arith.constant 0 : index
    %86 = vector.load %arg21[%c0_43, %c7_44, %c0_45] : memref<1x8x128xf32, #tpu.memory_space<vmem>>, vector<1x1x128xf32>
    %87 = vector.shape_cast %86 : vector<1x1x128xf32> to vector<1x128xf32>
    %88 = vector.extract_strided_slice %18 {offsets = [7, 0], sizes = [1, 128], strides = [1, 1]} : vector<8x128xf32> to vector<1x128xf32>
    %89 = vector.extract_strided_slice %18 {offsets = [0, 0], sizes = [7, 128], strides = [1, 1]} : vector<8x128xf32> to vector<7x128xf32>
    %90 = tpu.concatenate %88, %89 in 0 : vector<1x128xf32>, vector<7x128xf32> -> vector<8x128xf32>
    %91 = vector.shape_cast %87 : vector<1x128xf32> to vector<1x128xf32>
    %92 = vector.broadcast %91 : vector<1x128xf32> to vector<8x128xf32>
    %93 = arith.select %85, %92, %90 : vector<8x128xi1>, vector<8x128xf32>
    %c15_i32_46 = arith.constant 15 : i32
    %94 = vector.broadcast %c15_i32_46 : i32 to vector<8x128xi32>
    %95 = arith.cmpi eq, %20, %94 : vector<8x128xi32>
    %cst_47 = arith.constant 0.000000e+00 : f32
    %96 = vector.broadcast %cst_47 : f32 to vector<8x128xf32>
    %97 = arith.select %95, %96, %12 : vector<8x128xi1>, vector<8x128xf32>
    %c0_i32_48 = arith.constant 0 : i32
    %98 = vector.broadcast %c0_i32_48 : i32 to vector<8x128xi32>
    %99 = arith.cmpi eq, %20, %98 : vector<8x128xi32>
    %100 = vector.extract_strided_slice %12 {offsets = [0, 127], sizes = [8, 1], strides = [1, 1]} : vector<8x128xf32> to vector<8x1xf32>
    %101 = vector.extract_strided_slice %12 {offsets = [0, 0], sizes = [8, 127], strides = [1, 1]} : vector<8x128xf32> to vector<8x127xf32>
    %102 = tpu.concatenate %100, %101 in 1 : vector<8x1xf32>, vector<8x127xf32> -> vector<8x128xf32>
    %cst_49 = arith.constant 0.000000e+00 : f32
    %103 = vector.broadcast %cst_49 : f32 to vector<8x128xf32>
    %104 = arith.select %99, %103, %102 : vector<8x128xi1>, vector<8x128xf32>
    %105 = arith.subf %97, %104 : vector<8x128xf32>
    %cst_50 = arith.constant 0.000000e+00 : f32
    %106 = vector.broadcast %cst_50 : f32 to vector<8x128xf32>
    %107 = arith.select %26, %106, %14 : vector<8x128xi1>, vector<8x128xf32>
    %cst_51 = arith.constant 0.000000e+00 : f32
    %108 = vector.broadcast %cst_51 : f32 to vector<8x128xf32>
    %109 = arith.select %24, %108, %83 : vector<8x128xi1>, vector<8x128xf32>
    %110 = arith.subf %107, %109 : vector<8x128xf32>
    %111 = arith.addf %105, %110 : vector<8x128xf32>
    %cst_52 = arith.constant 3.000000e-01 : f32
    %112 = vector.broadcast %cst_52 : f32 to vector<8x128xf32>
    %113 = arith.mulf %112, %111 : vector<8x128xf32>
    %114 = arith.addf %72, %113 : vector<8x128xf32>
    %c15_i32_53 = arith.constant 15 : i32
    %115 = vector.broadcast %c15_i32_53 : i32 to vector<8x128xi32>
    %116 = arith.cmpi eq, %20, %115 : vector<8x128xi32>
    %cst_54 = arith.constant 0.000000e+00 : f32
    %117 = vector.broadcast %cst_54 : f32 to vector<8x128xf32>
    %118 = arith.select %116, %117, %16 : vector<8x128xi1>, vector<8x128xf32>
    %c0_i32_55 = arith.constant 0 : i32
    %119 = vector.broadcast %c0_i32_55 : i32 to vector<8x128xi32>
    %120 = arith.cmpi eq, %20, %119 : vector<8x128xi32>
    %121 = vector.extract_strided_slice %16 {offsets = [0, 127], sizes = [8, 1], strides = [1, 1]} : vector<8x128xf32> to vector<8x1xf32>
    %122 = vector.extract_strided_slice %16 {offsets = [0, 0], sizes = [8, 127], strides = [1, 1]} : vector<8x128xf32> to vector<8x127xf32>
    %123 = tpu.concatenate %121, %122 in 1 : vector<8x1xf32>, vector<8x127xf32> -> vector<8x128xf32>
    %cst_56 = arith.constant 0.000000e+00 : f32
    %124 = vector.broadcast %cst_56 : f32 to vector<8x128xf32>
    %125 = arith.select %120, %124, %123 : vector<8x128xi1>, vector<8x128xf32>
    %126 = arith.subf %118, %125 : vector<8x128xf32>
    %cst_57 = arith.constant 0.000000e+00 : f32
    %127 = vector.broadcast %cst_57 : f32 to vector<8x128xf32>
    %128 = arith.select %26, %127, %18 : vector<8x128xi1>, vector<8x128xf32>
    %cst_58 = arith.constant 0.000000e+00 : f32
    %129 = vector.broadcast %cst_58 : f32 to vector<8x128xf32>
    %130 = arith.select %24, %129, %93 : vector<8x128xi1>, vector<8x128xf32>
    %131 = arith.subf %128, %130 : vector<8x128xf32>
    %132 = arith.addf %126, %131 : vector<8x128xf32>
    %cst_59 = arith.constant 3.000000e-01 : f32
    %133 = vector.broadcast %cst_59 : f32 to vector<8x128xf32>
    %134 = arith.mulf %133, %132 : vector<8x128xf32>
    %135 = arith.addf %73, %134 : vector<8x128xf32>
    %136 = tpu.iota {dimensions = array<i32: 1>} : vector<8x128xi32>
    %c8_i32_60 = arith.constant 8 : i32
    %137 = arith.addi %0, %c8_i32_60 : i32
    %c0_61 = arith.constant 0 : index
    %c0_62 = arith.constant 0 : index
    %c0_63 = arith.constant 0 : index
    %138 = vector.load %arg11[%c0_61, %c0_62, %c0_63] : memref<1x8x128xf32, #tpu.memory_space<vmem>>, vector<1x8x128xf32>
    %139 = vector.shape_cast %138 : vector<1x8x128xf32> to vector<8x128xf32>
    %c0_64 = arith.constant 0 : index
    %c0_65 = arith.constant 0 : index
    %c0_66 = arith.constant 0 : index
    %140 = vector.load %arg12[%c0_64, %c0_65, %c0_66] : memref<1x8x128xf32, #tpu.memory_space<vmem>>, vector<1x8x128xf32>
    %141 = vector.shape_cast %140 : vector<1x8x128xf32> to vector<8x128xf32>
    %c0_67 = arith.constant 0 : index
    %c0_68 = arith.constant 0 : index
    %c0_69 = arith.constant 0 : index
    %142 = vector.load %arg13[%c0_67, %c0_68, %c0_69] : memref<1x8x128xf32, #tpu.memory_space<vmem>>, vector<1x8x128xf32>
    %143 = vector.shape_cast %142 : vector<1x8x128xf32> to vector<8x128xf32>
    %c0_70 = arith.constant 0 : index
    %c0_71 = arith.constant 0 : index
    %c0_72 = arith.constant 0 : index
    %144 = vector.load %arg14[%c0_70, %c0_71, %c0_72] : memref<1x8x128xf32, #tpu.memory_space<vmem>>, vector<1x8x128xf32>
    %145 = vector.shape_cast %144 : vector<1x8x128xf32> to vector<8x128xf32>
    %c0_73 = arith.constant 0 : index
    %c0_74 = arith.constant 0 : index
    %c0_75 = arith.constant 0 : index
    %146 = vector.load %arg15[%c0_73, %c0_74, %c0_75] : memref<1x8x128xf32, #tpu.memory_space<vmem>>, vector<1x8x128xf32>
    %147 = vector.shape_cast %146 : vector<1x8x128xf32> to vector<8x128xf32>
    %148 = arith.mulf %139, %143 : vector<8x128xf32>
    %cst_76 = arith.constant 0.000000e+00 : f32
    %149 = vector.broadcast %cst_76 : f32 to vector<8x128xf32>
    %150 = arith.addf %149, %148 : vector<8x128xf32>
    %151 = arith.mulf %141, %145 : vector<8x128xf32>
    %152 = arith.addf %150, %151 : vector<8x128xf32>
    %cst_77 = arith.constant 9.99999996E-13 : f32
    %153 = vector.broadcast %cst_77 : f32 to vector<8x128xf32>
    %154 = arith.addf %152, %153 : vector<8x128xf32>
    %cst_78 = arith.constant 4.500000e-02 : f32
    %155 = vector.broadcast %cst_78 : f32 to vector<8x128xf32>
    %156 = arith.mulf %155, %147 : vector<8x128xf32>
    %cst_79 = arith.constant 0.000000e+00 : f32
    %157 = vector.broadcast %cst_79 : f32 to vector<8x128xf32>
    %158 = arith.subf %157, %156 : vector<8x128xf32>
    %159 = arith.cmpf olt, %154, %158 : vector<8x128xf32>
    %160 = arith.cmpf ogt, %154, %156 : vector<8x128xf32>
    %cst_80 = arith.constant dense<true> : vector<8x128xi1>
    %161 = arith.xori %159, %cst_80 : vector<8x128xi1>
    %cst_81 = arith.constant dense<true> : vector<8x128xi1>
    %162 = arith.xori %160, %cst_81 : vector<8x128xi1>
    %163 = arith.andi %161, %162 : vector<8x128xi1>
    %cst_82 = arith.constant 9.99999996E-13 : f32
    %164 = vector.broadcast %cst_82 : f32 to vector<8x128xf32>
    %165 = arith.cmpf ogt, %147, %164 : vector<8x128xf32>
    %166 = arith.andi %163, %165 : vector<8x128xi1>
    %cst_83 = arith.constant 0.000000e+00 : f32
    %167 = vector.broadcast %cst_83 : f32 to vector<8x128xf32>
    %cst_84 = arith.constant 0.000000e+00 : f32
    %168 = vector.broadcast %cst_84 : f32 to vector<8x128xf32>
    %169 = arith.subf %168, %154 : vector<8x128xf32>
    %cst_85 = arith.constant 9.99999996E-13 : f32
    %170 = vector.broadcast %cst_85 : f32 to vector<8x128xf32>
    %171 = arith.maximumf %147, %170 : vector<8x128xf32>
    %172 = arith.divf %169, %171 : vector<8x128xf32>
    %cst_86 = arith.constant 4.500000e-02 : f32
    %173 = vector.broadcast %cst_86 : f32 to vector<8x128xf32>
    %174 = arith.mulf %173, %139 : vector<8x128xf32>
    %175 = arith.select %159, %174, %167 : vector<8x128xi1>, vector<8x128xf32>
    %cst_87 = arith.constant -4.500000e-02 : f32
    %176 = vector.broadcast %cst_87 : f32 to vector<8x128xf32>
    %177 = arith.mulf %176, %139 : vector<8x128xf32>
    %178 = arith.select %160, %177, %167 : vector<8x128xi1>, vector<8x128xf32>
    %179 = arith.addf %175, %178 : vector<8x128xf32>
    %180 = arith.mulf %172, %139 : vector<8x128xf32>
    %181 = arith.select %166, %180, %167 : vector<8x128xi1>, vector<8x128xf32>
    %182 = arith.addf %179, %181 : vector<8x128xf32>
    %cst_88 = arith.constant 4.500000e-02 : f32
    %183 = vector.broadcast %cst_88 : f32 to vector<8x128xf32>
    %184 = arith.mulf %183, %141 : vector<8x128xf32>
    %185 = arith.select %159, %184, %167 : vector<8x128xi1>, vector<8x128xf32>
    %cst_89 = arith.constant -4.500000e-02 : f32
    %186 = vector.broadcast %cst_89 : f32 to vector<8x128xf32>
    %187 = arith.mulf %186, %141 : vector<8x128xf32>
    %188 = arith.select %160, %187, %167 : vector<8x128xi1>, vector<8x128xf32>
    %189 = arith.addf %185, %188 : vector<8x128xf32>
    %190 = arith.mulf %172, %141 : vector<8x128xf32>
    %191 = arith.select %166, %190, %167 : vector<8x128xi1>, vector<8x128xf32>
    %192 = arith.addf %189, %191 : vector<8x128xf32>
    %193 = arith.addf %182, %143 : vector<8x128xf32>
    %194 = arith.addf %192, %145 : vector<8x128xf32>
    %c15_i32_90 = arith.constant 15 : i32
    %195 = arith.cmpi eq, %137, %c15_i32_90 : i32
    %c0_91 = arith.constant 0 : index
    %c0_92 = arith.constant 0 : index
    %c0_93 = arith.constant 0 : index
    %196 = vector.load %arg17[%c0_91, %c0_92, %c0_93] : memref<1x8x128xf32, #tpu.memory_space<vmem>>, vector<1x8x128xf32>
    %197 = vector.shape_cast %196 : vector<1x8x128xf32> to vector<8x128xf32>
    %cst_94 = arith.constant 0.000000e+00 : f32
    %198 = vector.broadcast %cst_94 : f32 to vector<8x128xf32>
    %199 = arith.select %195, %198, %197 : vector<8x128xf32>
    %200 = vector.extract_strided_slice %14 {offsets = [7, 0], sizes = [1, 128], strides = [1, 1]} : vector<8x128xf32> to vector<1x128xf32>
    %201 = vector.broadcast %200 : vector<1x128xf32> to vector<8x128xf32>
    %202 = arith.subf %199, %201 : vector<8x128xf32>
    %c0_95 = arith.constant 0 : index
    %c0_96 = arith.constant 0 : index
    %c0_97 = arith.constant 0 : index
    %203 = vector.load %arg19[%c0_95, %c0_96, %c0_97] : memref<1x8x128xf32, #tpu.memory_space<vmem>>, vector<1x8x128xf32>
    %204 = vector.shape_cast %203 : vector<1x8x128xf32> to vector<8x128xf32>
    %cst_98 = arith.constant 0.000000e+00 : f32
    %205 = vector.broadcast %cst_98 : f32 to vector<8x128xf32>
    %206 = arith.select %195, %205, %204 : vector<8x128xf32>
    %207 = vector.extract_strided_slice %18 {offsets = [7, 0], sizes = [1, 128], strides = [1, 1]} : vector<8x128xf32> to vector<1x128xf32>
    %208 = vector.broadcast %207 : vector<1x128xf32> to vector<8x128xf32>
    %209 = arith.subf %206, %208 : vector<8x128xf32>
    %c0_99 = arith.constant 0 : index
    %c0_100 = arith.constant 0 : index
    %c0_101 = arith.constant 0 : index
    %210 = vector.load %arg16[%c0_99, %c0_100, %c0_101] : memref<1x8x128xf32, #tpu.memory_space<vmem>>, vector<1x8x128xf32>
    %211 = vector.shape_cast %210 : vector<1x8x128xf32> to vector<8x128xf32>
    %c15_i32_102 = arith.constant 15 : i32
    %212 = vector.broadcast %c15_i32_102 : i32 to vector<8x128xi32>
    %213 = arith.cmpi eq, %136, %212 : vector<8x128xi32>
    %cst_103 = arith.constant 0.000000e+00 : f32
    %214 = vector.broadcast %cst_103 : f32 to vector<8x128xf32>
    %215 = arith.select %213, %214, %211 : vector<8x128xi1>, vector<8x128xf32>
    %c0_i32_104 = arith.constant 0 : i32
    %216 = vector.broadcast %c0_i32_104 : i32 to vector<8x128xi32>
    %217 = arith.cmpi eq, %136, %216 : vector<8x128xi32>
    %218 = vector.extract_strided_slice %211 {offsets = [0, 127], sizes = [8, 1], strides = [1, 1]} : vector<8x128xf32> to vector<8x1xf32>
    %219 = vector.extract_strided_slice %211 {offsets = [0, 0], sizes = [8, 127], strides = [1, 1]} : vector<8x128xf32> to vector<8x127xf32>
    %220 = tpu.concatenate %218, %219 in 1 : vector<8x1xf32>, vector<8x127xf32> -> vector<8x128xf32>
    %cst_105 = arith.constant 0.000000e+00 : f32
    %221 = vector.broadcast %cst_105 : f32 to vector<8x128xf32>
    %222 = arith.select %217, %221, %220 : vector<8x128xi1>, vector<8x128xf32>
    %223 = arith.subf %215, %222 : vector<8x128xf32>
    %224 = arith.addf %223, %202 : vector<8x128xf32>
    %cst_106 = arith.constant 3.000000e-01 : f32
    %225 = vector.broadcast %cst_106 : f32 to vector<8x128xf32>
    %226 = arith.mulf %225, %224 : vector<8x128xf32>
    %227 = arith.addf %193, %226 : vector<8x128xf32>
    %228 = vector.extract_strided_slice %227 {offsets = [0, 0], sizes = [1, 128], strides = [1, 1]} : vector<8x128xf32> to vector<1x128xf32>
    %c0_107 = arith.constant 0 : index
    %c0_108 = arith.constant 0 : index
    %c0_109 = arith.constant 0 : index
    %229 = vector.load %arg18[%c0_107, %c0_108, %c0_109] : memref<1x8x128xf32, #tpu.memory_space<vmem>>, vector<1x8x128xf32>
    %230 = vector.shape_cast %229 : vector<1x8x128xf32> to vector<8x128xf32>
    %c15_i32_110 = arith.constant 15 : i32
    %231 = vector.broadcast %c15_i32_110 : i32 to vector<8x128xi32>
    %232 = arith.cmpi eq, %136, %231 : vector<8x128xi32>
    %cst_111 = arith.constant 0.000000e+00 : f32
    %233 = vector.broadcast %cst_111 : f32 to vector<8x128xf32>
    %234 = arith.select %232, %233, %230 : vector<8x128xi1>, vector<8x128xf32>
    %c0_i32_112 = arith.constant 0 : i32
    %235 = vector.broadcast %c0_i32_112 : i32 to vector<8x128xi32>
    %236 = arith.cmpi eq, %136, %235 : vector<8x128xi32>
    %237 = vector.extract_strided_slice %230 {offsets = [0, 127], sizes = [8, 1], strides = [1, 1]} : vector<8x128xf32> to vector<8x1xf32>
    %238 = vector.extract_strided_slice %230 {offsets = [0, 0], sizes = [8, 127], strides = [1, 1]} : vector<8x128xf32> to vector<8x127xf32>
    %239 = tpu.concatenate %237, %238 in 1 : vector<8x1xf32>, vector<8x127xf32> -> vector<8x128xf32>
    %cst_113 = arith.constant 0.000000e+00 : f32
    %240 = vector.broadcast %cst_113 : f32 to vector<8x128xf32>
    %241 = arith.select %236, %240, %239 : vector<8x128xi1>, vector<8x128xf32>
    %242 = arith.subf %234, %241 : vector<8x128xf32>
    %243 = arith.addf %242, %209 : vector<8x128xf32>
    %cst_114 = arith.constant 3.000000e-01 : f32
    %244 = vector.broadcast %cst_114 : f32 to vector<8x128xf32>
    %245 = arith.mulf %244, %243 : vector<8x128xf32>
    %246 = arith.addf %194, %245 : vector<8x128xf32>
    %247 = vector.extract_strided_slice %246 {offsets = [0, 0], sizes = [1, 128], strides = [1, 1]} : vector<8x128xf32> to vector<1x128xf32>
    %c7_i32 = arith.constant 7 : i32
    %248 = vector.broadcast %c7_i32 : i32 to vector<8x128xi32>
    %249 = arith.cmpi eq, %19, %248 : vector<8x128xi32>
    %250 = vector.extract_strided_slice %114 {offsets = [1, 0], sizes = [7, 128], strides = [1, 1]} : vector<8x128xf32> to vector<7x128xf32>
    %251 = vector.extract_strided_slice %114 {offsets = [0, 0], sizes = [1, 128], strides = [1, 1]} : vector<8x128xf32> to vector<1x128xf32>
    %252 = tpu.concatenate %250, %251 in 0 : vector<7x128xf32>, vector<1x128xf32> -> vector<8x128xf32>
    %253 = vector.shape_cast %228 : vector<1x128xf32> to vector<1x128xf32>
    %254 = vector.broadcast %253 : vector<1x128xf32> to vector<8x128xf32>
    %255 = arith.select %249, %254, %252 : vector<8x128xi1>, vector<8x128xf32>
    %c7_i32_115 = arith.constant 7 : i32
    %256 = vector.broadcast %c7_i32_115 : i32 to vector<8x128xi32>
    %257 = arith.cmpi eq, %19, %256 : vector<8x128xi32>
    %258 = vector.extract_strided_slice %135 {offsets = [1, 0], sizes = [7, 128], strides = [1, 1]} : vector<8x128xf32> to vector<7x128xf32>
    %259 = vector.extract_strided_slice %135 {offsets = [0, 0], sizes = [1, 128], strides = [1, 1]} : vector<8x128xf32> to vector<1x128xf32>
    %260 = tpu.concatenate %258, %259 in 0 : vector<7x128xf32>, vector<1x128xf32> -> vector<8x128xf32>
    %261 = vector.shape_cast %247 : vector<1x128xf32> to vector<1x128xf32>
    %262 = vector.broadcast %261 : vector<1x128xf32> to vector<8x128xf32>
    %263 = arith.select %257, %262, %260 : vector<8x128xi1>, vector<8x128xf32>
    %c15_i32_116 = arith.constant 15 : i32
    %264 = vector.broadcast %c15_i32_116 : i32 to vector<8x128xi32>
    %265 = arith.cmpi eq, %20, %264 : vector<8x128xi32>
    %266 = vector.extract_strided_slice %114 {offsets = [0, 1], sizes = [8, 127], strides = [1, 1]} : vector<8x128xf32> to vector<8x127xf32>
    %267 = vector.extract_strided_slice %114 {offsets = [0, 0], sizes = [8, 1], strides = [1, 1]} : vector<8x128xf32> to vector<8x1xf32>
    %268 = tpu.concatenate %266, %267 in 1 : vector<8x127xf32>, vector<8x1xf32> -> vector<8x128xf32>
    %269 = arith.subf %268, %114 : vector<8x128xf32>
    %cst_117 = arith.constant 0.000000e+00 : f32
    %270 = vector.broadcast %cst_117 : f32 to vector<8x128xf32>
    %271 = arith.select %265, %270, %269 : vector<8x128xi1>, vector<8x128xf32>
    %c15_i32_118 = arith.constant 15 : i32
    %272 = vector.broadcast %c15_i32_118 : i32 to vector<8x128xi32>
    %273 = arith.cmpi eq, %20, %272 : vector<8x128xi32>
    %274 = vector.extract_strided_slice %135 {offsets = [0, 1], sizes = [8, 127], strides = [1, 1]} : vector<8x128xf32> to vector<8x127xf32>
    %275 = vector.extract_strided_slice %135 {offsets = [0, 0], sizes = [8, 1], strides = [1, 1]} : vector<8x128xf32> to vector<8x1xf32>
    %276 = tpu.concatenate %274, %275 in 1 : vector<8x127xf32>, vector<8x1xf32> -> vector<8x128xf32>
    %277 = arith.subf %276, %135 : vector<8x128xf32>
    %cst_119 = arith.constant 0.000000e+00 : f32
    %278 = vector.broadcast %cst_119 : f32 to vector<8x128xf32>
    %279 = arith.select %273, %278, %277 : vector<8x128xi1>, vector<8x128xf32>
    %280 = arith.subf %255, %114 : vector<8x128xf32>
    %cst_120 = arith.constant 0.000000e+00 : f32
    %281 = vector.broadcast %cst_120 : f32 to vector<8x128xf32>
    %282 = arith.select %26, %281, %280 : vector<8x128xi1>, vector<8x128xf32>
    %283 = arith.subf %263, %135 : vector<8x128xf32>
    %cst_121 = arith.constant 0.000000e+00 : f32
    %284 = vector.broadcast %cst_121 : f32 to vector<8x128xf32>
    %285 = arith.select %26, %284, %283 : vector<8x128xi1>, vector<8x128xf32>
    %286 = arith.mulf %271, %271 : vector<8x128xf32>
    %287 = arith.mulf %282, %282 : vector<8x128xf32>
    %288 = arith.addf %286, %287 : vector<8x128xf32>
    %cst_122 = arith.constant 9.99999996E-13 : f32
    %289 = vector.broadcast %cst_122 : f32 to vector<8x128xf32>
    %290 = arith.addf %288, %289 : vector<8x128xf32>
    %291 = math.sqrt %290 : vector<8x128xf32>
    %292 = arith.mulf %279, %279 : vector<8x128xf32>
    %293 = arith.mulf %285, %285 : vector<8x128xf32>
    %294 = arith.addf %292, %293 : vector<8x128xf32>
    %cst_123 = arith.constant 9.99999996E-13 : f32
    %295 = vector.broadcast %cst_123 : f32 to vector<8x128xf32>
    %296 = arith.addf %294, %295 : vector<8x128xf32>
    %297 = math.sqrt %296 : vector<8x128xf32>
    %cst_124 = arith.constant 2.500000e+00 : f32
    %298 = vector.broadcast %cst_124 : f32 to vector<8x128xf32>
    %299 = arith.mulf %298, %291 : vector<8x128xf32>
    %cst_125 = arith.constant 1.000000e+00 : f32
    %300 = vector.broadcast %cst_125 : f32 to vector<8x128xf32>
    %301 = arith.addf %300, %299 : vector<8x128xf32>
    %302 = tpu.reciprocal %301 : vector<8x128xf32> -> vector<8x128xf32>
    %cst_126 = arith.constant 2.500000e+00 : f32
    %303 = vector.broadcast %cst_126 : f32 to vector<8x128xf32>
    %304 = arith.mulf %303, %297 : vector<8x128xf32>
    %cst_127 = arith.constant 1.000000e+00 : f32
    %305 = vector.broadcast %cst_127 : f32 to vector<8x128xf32>
    %306 = arith.addf %305, %304 : vector<8x128xf32>
    %307 = tpu.reciprocal %306 : vector<8x128xf32> -> vector<8x128xf32>
    %cst_128 = arith.constant 2.500000e+00 : f32
    %308 = vector.broadcast %cst_128 : f32 to vector<8x128xf32>
    %309 = arith.mulf %308, %271 : vector<8x128xf32>
    %310 = arith.addf %12, %309 : vector<8x128xf32>
    %311 = arith.mulf %310, %302 : vector<8x128xf32>
    %c0_129 = arith.constant 0 : index
    %c0_130 = arith.constant 0 : index
    %c0_131 = arith.constant 0 : index
    %312 = vector.load %arg22[%c0_129, %c0_130, %c0_131] : memref<1x8x128xf32, #tpu.memory_space<vmem>>, vector<1x8x128xf32>
    %313 = vector.shape_cast %312 : vector<1x8x128xf32> to vector<8x128xf32>
    %314 = vector.shape_cast %311 : vector<8x128xf32> to vector<1x8x128xf32>
    tpu.vector_store %arg22[%c0_129, %c0_130, %c0_131], %314 {strides = array<i32>} : memref<1x8x128xf32, #tpu.memory_space<vmem>>, vector<1x8x128xf32>,
    %cst_132 = arith.constant 2.500000e+00 : f32
    %315 = vector.broadcast %cst_132 : f32 to vector<8x128xf32>
    %316 = arith.mulf %315, %282 : vector<8x128xf32>
    %317 = arith.addf %14, %316 : vector<8x128xf32>
    %318 = arith.mulf %317, %302 : vector<8x128xf32>
    %c0_133 = arith.constant 0 : index
    %c0_134 = arith.constant 0 : index
    %c0_135 = arith.constant 0 : index
    %319 = vector.load %arg23[%c0_133, %c0_134, %c0_135] : memref<1x8x128xf32, #tpu.memory_space<vmem>>, vector<1x8x128xf32>
    %320 = vector.shape_cast %319 : vector<1x8x128xf32> to vector<8x128xf32>
    %321 = vector.shape_cast %318 : vector<8x128xf32> to vector<1x8x128xf32>
    tpu.vector_store %arg23[%c0_133, %c0_134, %c0_135], %321 {strides = array<i32>} : memref<1x8x128xf32, #tpu.memory_space<vmem>>, vector<1x8x128xf32>,
    %cst_136 = arith.constant 2.500000e+00 : f32
    %322 = vector.broadcast %cst_136 : f32 to vector<8x128xf32>
    %323 = arith.mulf %322, %279 : vector<8x128xf32>
    %324 = arith.addf %16, %323 : vector<8x128xf32>
    %325 = arith.mulf %324, %307 : vector<8x128xf32>
    %c0_137 = arith.constant 0 : index
    %c0_138 = arith.constant 0 : index
    %c0_139 = arith.constant 0 : index
    %326 = vector.load %arg24[%c0_137, %c0_138, %c0_139] : memref<1x8x128xf32, #tpu.memory_space<vmem>>, vector<1x8x128xf32>
    %327 = vector.shape_cast %326 : vector<1x8x128xf32> to vector<8x128xf32>
    %328 = vector.shape_cast %325 : vector<8x128xf32> to vector<1x8x128xf32>
    tpu.vector_store %arg24[%c0_137, %c0_138, %c0_139], %328 {strides = array<i32>} : memref<1x8x128xf32, #tpu.memory_space<vmem>>, vector<1x8x128xf32>,
    %cst_140 = arith.constant 2.500000e+00 : f32
    %329 = vector.broadcast %cst_140 : f32 to vector<8x128xf32>
    %330 = arith.mulf %329, %285 : vector<8x128xf32>
    %331 = arith.addf %18, %330 : vector<8x128xf32>
    %332 = arith.mulf %331, %307 : vector<8x128xf32>
    %c0_141 = arith.constant 0 : index
    %c0_142 = arith.constant 0 : index
    %c0_143 = arith.constant 0 : index
    %333 = vector.load %arg25[%c0_141, %c0_142, %c0_143] : memref<1x8x128xf32, #tpu.memory_space<vmem>>, vector<1x8x128xf32>
    %334 = vector.shape_cast %333 : vector<1x8x128xf32> to vector<8x128xf32>
    %335 = vector.shape_cast %332 : vector<8x128xf32> to vector<1x8x128xf32>
    tpu.vector_store %arg25[%c0_141, %c0_142, %c0_143], %335 {strides = array<i32>} : memref<1x8x128xf32, #tpu.memory_space<vmem>>, vector<1x8x128xf32>,
    %c0_144 = arith.constant 0 : index
    %c0_145 = arith.constant 0 : index
    %c0_146 = arith.constant 0 : index
    %336 = vector.load %arg26[%c0_144, %c0_145, %c0_146] : memref<1x8x128xf32, #tpu.memory_space<vmem>>, vector<1x8x128xf32>
    %337 = vector.shape_cast %336 : vector<1x8x128xf32> to vector<8x128xf32>
    %338 = vector.shape_cast %33 : vector<8x128xf32> to vector<1x8x128xf32>
    tpu.vector_store %arg26[%c0_144, %c0_145, %c0_146], %338 {strides = array<i32>} : memref<1x8x128xf32, #tpu.memory_space<vmem>>, vector<1x8x128xf32>,
    %c0_147 = arith.constant 0 : index
    %c0_148 = arith.constant 0 : index
    %c0_149 = arith.constant 0 : index
    %339 = vector.load %arg27[%c0_147, %c0_148, %c0_149] : memref<1x8x128xf32, #tpu.memory_space<vmem>>, vector<1x8x128xf32>
    %340 = vector.shape_cast %339 : vector<1x8x128xf32> to vector<8x128xf32>
    %341 = vector.shape_cast %114 : vector<8x128xf32> to vector<1x8x128xf32>
    tpu.vector_store %arg27[%c0_147, %c0_148, %c0_149], %341 {strides = array<i32>} : memref<1x8x128xf32, #tpu.memory_space<vmem>>, vector<1x8x128xf32>,
    %c0_150 = arith.constant 0 : index
    %c0_151 = arith.constant 0 : index
    %c0_152 = arith.constant 0 : index
    %342 = vector.load %arg28[%c0_150, %c0_151, %c0_152] : memref<1x8x128xf32, #tpu.memory_space<vmem>>, vector<1x8x128xf32>
    %343 = vector.shape_cast %342 : vector<1x8x128xf32> to vector<8x128xf32>
    %344 = vector.shape_cast %135 : vector<8x128xf32> to vector<1x8x128xf32>
    tpu.vector_store %arg28[%c0_150, %c0_151, %c0_152], %344 {strides = array<i32>} : memref<1x8x128xf32, #tpu.memory_space<vmem>>, vector<1x8x128xf32>,
    return
  }
  func.func @transform_0(%arg0: i32, %arg1: i32) -> (i32, i32, i32) {
    %c0_i32 = arith.constant 0 : i32
    %c0_i32_0 = arith.constant 0 : i32
    return %arg0, %arg1, %c0_i32 : i32, i32, i32
  }
  func.func @transform_1(%arg0: i32, %arg1: i32) -> (i32, i32, i32) {
    %c0_i32 = arith.constant 0 : i32
    %c0_i32_0 = arith.constant 0 : i32
    return %arg0, %arg1, %c0_i32 : i32, i32, i32
  }
  func.func @transform_2(%arg0: i32, %arg1: i32) -> (i32, i32, i32) {
    %c0_i32 = arith.constant 0 : i32
    %c0_i32_0 = arith.constant 0 : i32
    return %arg0, %arg1, %c0_i32 : i32, i32, i32
  }
  func.func @transform_3(%arg0: i32, %arg1: i32) -> (i32, i32, i32) {
    %c0_i32 = arith.constant 0 : i32
    %c0_i32_0 = arith.constant 0 : i32
    return %arg0, %arg1, %c0_i32 : i32, i32, i32
  }
  func.func @transform_4(%arg0: i32, %arg1: i32) -> (i32, i32, i32) {
    %c0_i32 = arith.constant 0 : i32
    %c0_i32_0 = arith.constant 0 : i32
    return %arg0, %arg1, %c0_i32 : i32, i32, i32
  }
  func.func @transform_5(%arg0: i32, %arg1: i32) -> (i32, i32, i32) {
    %c0_i32 = arith.constant 0 : i32
    %c0_i32_0 = arith.constant 0 : i32
    return %arg0, %arg1, %c0_i32 : i32, i32, i32
  }
  func.func @transform_6(%arg0: i32, %arg1: i32) -> (i32, i32, i32) {
    %c0_i32 = arith.constant 0 : i32
    %c0_i32_0 = arith.constant 0 : i32
    return %arg0, %arg1, %c0_i32 : i32, i32, i32
  }
  func.func @transform_7(%arg0: i32, %arg1: i32) -> (i32, i32, i32) {
    %c0_i32 = arith.constant 0 : i32
    %c0_i32_0 = arith.constant 0 : i32
    return %arg0, %arg1, %c0_i32 : i32, i32, i32
  }
  func.func @transform_8(%arg0: i32, %arg1: i32) -> (i32, i32, i32) {
    %c0_i32 = arith.constant 0 : i32
    %c0_i32_0 = arith.constant 0 : i32
    return %arg0, %arg1, %c0_i32 : i32, i32, i32
  }
  func.func @transform_9(%arg0: i32, %arg1: i32) -> (i32, i32, i32) {
    %c1_i32 = arith.constant 1 : i32
    %0 = arith.addi %arg1, %c1_i32 : i32
    %c1_i32_0 = arith.constant 1 : i32
    %1 = arith.muli %0, %c1_i32_0 : i32
    %c1_i32_1 = arith.constant 1 : i32
    %2 = arith.minsi %1, %c1_i32_1 : i32
    %c0_i32 = arith.constant 0 : i32
    %c0_i32_2 = arith.constant 0 : i32
    return %arg0, %2, %c0_i32 : i32, i32, i32
  }
  func.func @transform_10(%arg0: i32, %arg1: i32) -> (i32, i32, i32) {
    %c1_i32 = arith.constant 1 : i32
    %0 = arith.addi %arg1, %c1_i32 : i32
    %c1_i32_0 = arith.constant 1 : i32
    %1 = arith.muli %0, %c1_i32_0 : i32
    %c1_i32_1 = arith.constant 1 : i32
    %2 = arith.minsi %1, %c1_i32_1 : i32
    %c0_i32 = arith.constant 0 : i32
    %c0_i32_2 = arith.constant 0 : i32
    return %arg0, %2, %c0_i32 : i32, i32, i32
  }
  func.func @transform_11(%arg0: i32, %arg1: i32) -> (i32, i32, i32) {
    %c1_i32 = arith.constant 1 : i32
    %0 = arith.addi %arg1, %c1_i32 : i32
    %c1_i32_0 = arith.constant 1 : i32
    %1 = arith.muli %0, %c1_i32_0 : i32
    %c1_i32_1 = arith.constant 1 : i32
    %2 = arith.minsi %1, %c1_i32_1 : i32
    %c0_i32 = arith.constant 0 : i32
    %c0_i32_2 = arith.constant 0 : i32
    return %arg0, %2, %c0_i32 : i32, i32, i32
  }
  func.func @transform_12(%arg0: i32, %arg1: i32) -> (i32, i32, i32) {
    %c1_i32 = arith.constant 1 : i32
    %0 = arith.addi %arg1, %c1_i32 : i32
    %c1_i32_0 = arith.constant 1 : i32
    %1 = arith.muli %0, %c1_i32_0 : i32
    %c1_i32_1 = arith.constant 1 : i32
    %2 = arith.minsi %1, %c1_i32_1 : i32
    %c0_i32 = arith.constant 0 : i32
    %c0_i32_2 = arith.constant 0 : i32
    return %arg0, %2, %c0_i32 : i32, i32, i32
  }
  func.func @transform_13(%arg0: i32, %arg1: i32) -> (i32, i32, i32) {
    %c1_i32 = arith.constant 1 : i32
    %0 = arith.addi %arg1, %c1_i32 : i32
    %c1_i32_0 = arith.constant 1 : i32
    %1 = arith.muli %0, %c1_i32_0 : i32
    %c1_i32_1 = arith.constant 1 : i32
    %2 = arith.minsi %1, %c1_i32_1 : i32
    %c0_i32 = arith.constant 0 : i32
    %c0_i32_2 = arith.constant 0 : i32
    return %arg0, %2, %c0_i32 : i32, i32, i32
  }
  func.func @transform_14(%arg0: i32, %arg1: i32) -> (i32, i32, i32) {
    %c1_i32 = arith.constant 1 : i32
    %0 = arith.addi %arg1, %c1_i32 : i32
    %c1_i32_0 = arith.constant 1 : i32
    %1 = arith.muli %0, %c1_i32_0 : i32
    %c1_i32_1 = arith.constant 1 : i32
    %2 = arith.minsi %1, %c1_i32_1 : i32
    %c0_i32 = arith.constant 0 : i32
    %c0_i32_2 = arith.constant 0 : i32
    return %arg0, %2, %c0_i32 : i32, i32, i32
  }
  func.func @transform_15(%arg0: i32, %arg1: i32) -> (i32, i32, i32) {
    %c1_i32 = arith.constant 1 : i32
    %0 = arith.addi %arg1, %c1_i32 : i32
    %c1_i32_0 = arith.constant 1 : i32
    %1 = arith.muli %0, %c1_i32_0 : i32
    %c1_i32_1 = arith.constant 1 : i32
    %2 = arith.minsi %1, %c1_i32_1 : i32
    %c0_i32 = arith.constant 0 : i32
    %c0_i32_2 = arith.constant 0 : i32
    return %arg0, %2, %c0_i32 : i32, i32, i32
  }
  func.func @transform_16(%arg0: i32, %arg1: i32) -> (i32, i32, i32) {
    %c1_i32 = arith.constant 1 : i32
    %0 = arith.addi %arg1, %c1_i32 : i32
    %c1_i32_0 = arith.constant 1 : i32
    %1 = arith.muli %0, %c1_i32_0 : i32
    %c1_i32_1 = arith.constant 1 : i32
    %2 = arith.minsi %1, %c1_i32_1 : i32
    %c0_i32 = arith.constant 0 : i32
    %c0_i32_2 = arith.constant 0 : i32
    return %arg0, %2, %c0_i32 : i32, i32, i32
  }
  func.func @transform_17(%arg0: i32, %arg1: i32) -> (i32, i32, i32) {
    %c1_i32 = arith.constant 1 : i32
    %0 = arith.addi %arg1, %c1_i32 : i32
    %c1_i32_0 = arith.constant 1 : i32
    %1 = arith.muli %0, %c1_i32_0 : i32
    %c1_i32_1 = arith.constant 1 : i32
    %2 = arith.minsi %1, %c1_i32_1 : i32
    %c0_i32 = arith.constant 0 : i32
    %c0_i32_2 = arith.constant 0 : i32
    return %arg0, %2, %c0_i32 : i32, i32, i32
  }
  func.func @transform_18(%arg0: i32, %arg1: i32) -> (i32, i32, i32) {
    %c1_i32 = arith.constant 1 : i32
    %0 = arith.muli %arg1, %c1_i32 : i32
    %c1_i32_0 = arith.constant 1 : i32
    %1 = arith.subi %0, %c1_i32_0 : i32
    %c0_i32 = arith.constant 0 : i32
    %2 = arith.maxsi %1, %c0_i32 : i32
    %c0_i32_1 = arith.constant 0 : i32
    %c0_i32_2 = arith.constant 0 : i32
    return %arg0, %2, %c0_i32_1 : i32, i32, i32
  }
  func.func @transform_19(%arg0: i32, %arg1: i32) -> (i32, i32, i32) {
    %c1_i32 = arith.constant 1 : i32
    %0 = arith.muli %arg1, %c1_i32 : i32
    %c1_i32_0 = arith.constant 1 : i32
    %1 = arith.subi %0, %c1_i32_0 : i32
    %c0_i32 = arith.constant 0 : i32
    %2 = arith.maxsi %1, %c0_i32 : i32
    %c0_i32_1 = arith.constant 0 : i32
    %c0_i32_2 = arith.constant 0 : i32
    return %arg0, %2, %c0_i32_1 : i32, i32, i32
  }
  func.func @transform_20(%arg0: i32, %arg1: i32) -> (i32, i32, i32) {
    %c0_i32 = arith.constant 0 : i32
    %c0_i32_0 = arith.constant 0 : i32
    return %arg0, %arg1, %c0_i32 : i32, i32, i32
  }
  func.func @transform_21(%arg0: i32, %arg1: i32) -> (i32, i32, i32) {
    %c0_i32 = arith.constant 0 : i32
    %c0_i32_0 = arith.constant 0 : i32
    return %arg0, %arg1, %c0_i32 : i32, i32, i32
  }
  func.func @transform_22(%arg0: i32, %arg1: i32) -> (i32, i32, i32) {
    %c0_i32 = arith.constant 0 : i32
    %c0_i32_0 = arith.constant 0 : i32
    return %arg0, %arg1, %c0_i32 : i32, i32, i32
  }
  func.func @transform_23(%arg0: i32, %arg1: i32) -> (i32, i32, i32) {
    %c0_i32 = arith.constant 0 : i32
    %c0_i32_0 = arith.constant 0 : i32
    return %arg0, %arg1, %c0_i32 : i32, i32, i32
  }
  func.func @transform_24(%arg0: i32, %arg1: i32) -> (i32, i32, i32) {
    %c0_i32 = arith.constant 0 : i32
    %c0_i32_0 = arith.constant 0 : i32
    return %arg0, %arg1, %c0_i32 : i32, i32, i32
  }
  func.func @transform_25(%arg0: i32, %arg1: i32) -> (i32, i32, i32) {
    %c0_i32 = arith.constant 0 : i32
    %c0_i32_0 = arith.constant 0 : i32
    return %arg0, %arg1, %c0_i32 : i32, i32, i32
  }
  func.func @transform_26(%arg0: i32, %arg1: i32) -> (i32, i32, i32) {
    %c0_i32 = arith.constant 0 : i32
    %c0_i32_0 = arith.constant 0 : i32
    return %arg0, %arg1, %c0_i32 : i32, i32, i32
  }
}

</mosaic_0001>

<bundles_post_ra>
// kernel: tpu_custom_call.1
= control target key start
LH: loop header
LB: loop body
LE: loop exit
PB: predicated region body
PF: predicated region fallthrough
CT: control target
= control target key end

     0   :  { %8 = vsyncpa [#allocation3], 0  ;;  %s158_s0 = inlined_call_operand.hbm [shape: f32[8,128], index: 0, kind: input, shape index: {}]   ;;  %s159_s1 = inlined_call_operand.hbm [shape: f32[8,128], index: 1, kind: output, shape index: {0}]   ;;  %s160_s2 = inlined_call_operand.hbm [shape: f32[8,128], index: 2, kind: output, shape index: {1}]  }
   0x1   :  { %9 = vsyncpa [#allocation4], 0 }
   0x2   :  { %10 = vsyncpa [#allocation7], 0  ;;  %s130_s9 = smov [#allocation2]  }
   0x3   :  { %s17_s10 = sshll.u32 %s130_s9, 4  ;;  %s18_s10 = int_to_ptr.vmem [resolvable:$true] %s17_s10 }
   0x4   :  { %s72_s11 = scalar_lea.vmem %s18_s10, 128  ;;  %p77_p1 = scmp.lt.s32.totalorder %s18_s10, %s18_s10 }
   0x5   :  { %p73_p0 = scmp.ne.s32.totalorder %s18_s10, %s72_s11  ;;  %p78_p2 = scmp.lt.s32.totalorder %s72_s11, %s72_s11 }
   0x7   :  { %p79_p3 = por %p78_p2, %p77_p1 }
   0x9   :  { %p80_p4 = pnand %p79_p3, %p73_p0 }
   0xb   :  { %83 = shalt.err (!%p80_p4)
}
   0xc   :  { %20 = dma.hbm_to_vmem [thread:$0]  %s158_s0, 128, %s18_s10, [#allocation3]  }
   0xd   :  { %124 = dma.done.wait [#allocation3], 128  }
   0xe   :  { %125 = vsyncadd [#allocation3], 4294967168  ;;  %s131_s14 = smov [#allocation6]   ;;  %v24_v0 = vld [vmem:[#allocation2] sm:$0xff]  ;;  %s132_s16 = smov 1  }
   0xf   :  { %s47_s15 = sshll.u32 %s131_s14, 4  ;;  %25 = vrot.lane.b32.xlu0 %v24_v0, %s132_s16  ;;  %v29_v1 = vrot.slane %v24_v0, 7  ;;  %s48_s15 = int_to_ptr.vmem [resolvable:$true] %s47_s15 }
  0x10   :  { %s84_s17 = scalar_lea.vmem %s48_s15, 128  ;;  %p89_p6 = scmp.lt.s32.totalorder %s48_s15, %s48_s15 }
  0x11   :  { %30 = vst [vmem:[#allocation6] sm:$0xff] %v29_v1  ;;  %p85_p5 = scmp.ne.s32.totalorder %s48_s15, %s84_s17  ;;  %p90_p7 = scmp.lt.s32.totalorder %s84_s17, %s84_s17 }
  0x13   :  { %p91_p8 = por %p90_p7, %p89_p6 }
  0x15   :  { %p92_p9 = pnand %p91_p8, %p85_p5 }
  0x17   :  { %95 = shalt.err (!%p92_p9)
}
  0x18   :  { %50 = dma.vmem_to_hbm [thread:$0]  %s48_s15, 128, %s160_s2, [#allocation7]  }
  0x19   :  { %s133_s0 = smov [#allocation5]  }
  0x1a   :  { %s37_s20 = sshll.u32 %s133_s0, 4  ;;  %s38_s20 = int_to_ptr.vmem [resolvable:$true] %s37_s20 }
  0x1b   :  { %s104_s21 = scalar_lea.vmem %s38_s20, 128  ;;  %p109_p11 = scmp.lt.s32.totalorder %s38_s20, %s38_s20 }
  0x1c   :  { %p105_p10 = scmp.ne.s32.totalorder %s38_s20, %s104_s21  ;;  %p110_p12 = scmp.lt.s32.totalorder %s104_s21, %s104_s21 }
  0x1e   :  { %p111_p13 = por %p110_p12, %p109_p11 }
  0x20   :  { %p112_p0 = pnand %p111_p13, %p105_p10 }
  0x81   :  { %v26_v2 = vpop.permute.xlu0 %25 }
  0x82   :  { %27 = vst [vmem:[#allocation5] sm:$0xff] %v26_v2 }
  0x83   :  { %115 = shalt.err (!%p112_p0)
}
  0x84   :  { %40 = dma.vmem_to_hbm [thread:$0]  %s38_s20, 128, %s159_s1, [#allocation4]  }
  0x85   :  { %126 = dma.done.wait [#allocation4], 128  }
  0x86   :  { %127 = vsyncadd [#allocation4], 4294967168 }
  0x87   :  { %128 = dma.done.wait [#allocation7], 128  }
  0x88   :  { %129 = vsyncadd [#allocation7], 4294967168 }
  0x89   :  { %57 = vsyncpa [#allocation3], 1 }
  0x8a   :  { %58 = vsyncpa [#allocation4], 1 }
  0x8b   :  { %59 = vsyncpa [#allocation7], 1 }

// kernel: tpu_custom_call.1
= control target key start
LH: loop header
LB: loop body
LE: loop exit
PB: predicated region body
PF: predicated region fallthrough
CT: control target
= control target key end

     0   :  { %s5435_s0 = inlined_call_operand.hbm [shape: f32[2,16,128], index: 0, kind: input, shape index: {}]   ;;  %s5436_s1 = inlined_call_operand.hbm [shape: f32[2,16,128], index: 1, kind: input, shape index: {}]   ;;  %s5437_s2 = inlined_call_operand.hbm [shape: f32[2,16,128], index: 2, kind: input, shape index: {}]   ;;  %s5438_s3 = inlined_call_operand.hbm [shape: f32[2,16,128], index: 3, kind: input, shape index: {}]   ;;  %s5439_s4 = inlined_call_operand.hbm [shape: f32[2,16,128], index: 4, kind: input, shape index: {}]   ;;  %s5440_s5 = inlined_call_operand.hbm [shape: f32[2,16,128], index: 5, kind: input, shape index: {}]   ;;  %s5441_s6 = inlined_call_operand.hbm [shape: f32[2,16,128], index: 6, kind: input, shape index: {}]   ;;  %s5442_s7 = inlined_call_operand.hbm [shape: f32[2,16,128], index: 7, kind: input, shape index: {}]   ;;  %s5443_s8 = inlined_call_operand.hbm [shape: f32[2,16,128], index: 8, kind: input, shape index: {}]   ;;  %s5444_s9 = inlined_call_operand.hbm [shape: f32[2,16,128], index: 9, kind: input, shape index: {}]   ;;  %s5445_s10 = inlined_call_operand.hbm [shape: f32[2,16,128], index: 10, kind: input, shape index: {}]   ;;  %s5446_s11 = inlined_call_operand.hbm [shape: f32[2,16,128], index: 11, kind: input, shape index: {}]   ;;  %s5447_s12 = inlined_call_operand.hbm [shape: f32[2,16,128], index: 12, kind: input, shape index: {}]   ;;  %s5448_s13 = inlined_call_operand.hbm [shape: f32[2,16,128], index: 13, kind: input, shape index: {}]   ;;  %s5449_s14 = inlined_call_operand.hbm [shape: f32[2,16,128], index: 14, kind: input, shape index: {}]   ;;  %s5450_s15 = inlined_call_operand.hbm [shape: f32[2,16,128], index: 15, kind: input, shape index: {}]   ;;  %s5451_s16 = inlined_call_operand.hbm [shape: f32[2,16,128], index: 16, kind: input, shape index: {}]   ;;  %s5452_s17 = inlined_call_operand.hbm [shape: f32[2,16,128], index: 17, kind: input, shape index: {}]   ;;  %s5453_s18 = inlined_call_operand.vmem [shape: f32[2,16,128], index: 18, kind: input, shape index: {}]   ;;  %s5454_s19 = inlined_call_operand.hbm [shape: f32[2,16,128], index: 19, kind: input, shape index: {}]   ;;  %s5455_s20 = inlined_call_operand.hbm [shape: f32[2,16,128], index: 20, kind: output, shape index: {0}]   ;;  %s5456_s21 = inlined_call_operand.hbm [shape: f32[2,16,128], index: 21, kind: output, shape index: {1}]   ;;  %s5457_s22 = inlined_call_operand.hbm [shape: f32[2,16,128], index: 22, kind: output, shape index: {2}]   ;;  %s5458_s23 = inlined_call_operand.hbm [shape: f32[2,16,128], index: 23, kind: output, shape index: {3}]   ;;  %s5459_s24 = inlined_call_operand.hbm [shape: f32[2,16,128], index: 24, kind: output, shape index: {4}]   ;;  %s5460_s25 = inlined_call_operand.hbm [shape: f32[2,16,128], index: 25, kind: output, shape index: {5}]   ;;  %s5461_s26 = inlined_call_operand.hbm [shape: f32[2,16,128], index: 26, kind: output, shape index: {6}]  }
   0x1   :  { %5527 = sst [smem:[#allocation78_spill]] %s5435_s0 }
   0x2   :  { %5528 = sst [smem:[#allocation79_spill]] %s5436_s1 }
   0x3   :  { %5529 = sst [smem:[#allocation80_spill]] %s5437_s2 }
   0x4   :  { %5530 = sst [smem:[#allocation81_spill]] %s5438_s3 }
   0x5   :  { %5531 = sst [smem:[#allocation82_spill]] %s5439_s4 }
   0x6   :  { %5532 = sst [smem:[#allocation83_spill]] %s5440_s5 }
   0x7   :  { %5533 = sst [smem:[#allocation84_spill]] %s5441_s6 }
   0x8   :  { %5534 = sst [smem:[#allocation85_spill]] %s5442_s7 }
   0x9   :  { %5535 = sst [smem:[#allocation86_spill]] %s5443_s8 }
   0xa   :  { %5536 = sst [smem:[#allocation87_spill]] %s5444_s9 }
   0xb   :  { %5537 = sst [smem:[#allocation88_spill]] %s5445_s10 }
   0xc   :  { %5538 = sst [smem:[#allocation89_spill]] %s5446_s11 }
   0xd   :  { %5539 = sst [smem:[#allocation90_spill]] %s5447_s12 }
   0xe   :  { %5540 = sst [smem:[#allocation91_spill]] %s5448_s13 }
   0xf   :  { %5541 = sst [smem:[#allocation92_spill]] %s5449_s14 }
  0x10   :  { %5542 = sst [smem:[#allocation93_spill]] %s5450_s15 }
  0x11   :  { %5543 = sst [smem:[#allocation94_spill]] %s5451_s16 }
  0x12   :  { %5544 = sst [smem:[#allocation95_spill]] %s5452_s17 }
  0x13   :  { %5545 = sst [smem:[#allocation96_spill]] %s5453_s18 }
  0x14   :  { %5546 = sst [smem:[#allocation97_spill]] %s5454_s19 }
  0x15   :  { %5547 = sst [smem:[#allocation98_spill]] %s5455_s20 }
  0x16   :  { %5548 = sst [smem:[#allocation99_spill]] %s5456_s21 }
  0x17   :  { %5549 = sst [smem:[#allocation100_spill]] %s5457_s22 }
  0x18   :  { %5550 = sst [smem:[#allocation101_spill]] %s5458_s23 }
  0x19   :  { %5551 = sst [smem:[#allocation102_spill]] %s5459_s24 }
  0x1a   :  { %5552 = sst [smem:[#allocation103_spill]] %s5460_s25 }
  0x1b   :  { %5553 = sst [smem:[#allocation104_spill]] %s5461_s26 }
  0x1c   :  { %32 = vsyncpa [#allocation3], 0 }
  0x1d   :  { %34 = vsyncpa [#allocation3 + $0x1], 0 }
  0x1e   :  { %35 = vsyncpa [#allocation6], 0 }
  0x1f   :  { %37 = vsyncpa [#allocation6 + $0x1], 0 }
  0x20   :  { %38 = vsyncpa [#allocation9], 0 }
  0x21   :  { %40 = vsyncpa [#allocation9 + $0x1], 0 }
  0x22   :  { %41 = vsyncpa [#allocation12], 0 }
  0x23   :  { %43 = vsyncpa [#allocation12 + $0x1], 0 }
  0x24   :  { %44 = vsyncpa [#allocation15], 0 }
  0x25   :  { %46 = vsyncpa [#allocation15 + $0x1], 0 }
  0x26   :  { %47 = vsyncpa [#allocation18], 0 }
  0x27   :  { %49 = vsyncpa [#allocation18 + $0x1], 0 }
  0x28   :  { %50 = vsyncpa [#allocation21], 0 }
  0x29   :  { %52 = vsyncpa [#allocation21 + $0x1], 0 }
  0x2a   :  { %53 = vsyncpa [#allocation24], 0 }
  0x2b   :  { %55 = vsyncpa [#allocation24 + $0x1], 0 }
  0x2c   :  { %56 = vsyncpa [#allocation27], 0 }
  0x2d   :  { %58 = vsyncpa [#allocation27 + $0x1], 0 }
  0x2e   :  { %59 = vsyncpa [#allocation30], 0 }
  0x2f   :  { %61 = vsyncpa [#allocation30 + $0x1], 0 }
  0x30   :  { %62 = vsyncpa [#allocation4], 0 }
  0x31   :  { %64 = vsyncpa [#allocation4 + $0x1], 0 }
  0x32   :  { %65 = vsyncpa [#allocation34], 0 }
  0x33   :  { %67 = vsyncpa [#allocation34 + $0x1], 0 }
  0x34   :  { %68 = vsyncpa [#allocation37], 0 }
  0x35   :  { %70 = vsyncpa [#allocation37 + $0x1], 0 }
  0x36   :  { %71 = vsyncpa [#allocation40], 0 }
  0x37   :  { %73 = vsyncpa [#allocation40 + $0x1], 0  ;;  %s4249_s27 = smov 0   ;;  %s4251_s3 = smov 0  }
  0x38   :  { %s4253_s7 = smov 0   ;;  %s4255_s28 = smov 0  }
  0x39   :  { %s4257_s8 = smov 0   ;;  %s4259_s4 = smov 0  }
  0x3a   :  { %s4261_s29 = smov 0   ;;  %s4263_s0 = smov 0  }
  0x3b   :  { %s4265_s9 = smov 0   ;;  %s4267_s30 = smov 0  }
  0x3c   :  { %s4269_s2 = smov 0   ;;  %s4271_s5 = smov 0  }
  0x3d   :  { %s4273_s10 = smov 0   ;;  %s4275_s6 = smov 0  }
  0x3e LB: > { %5554 = sst [smem:[#allocation57_spill]] %s4035_s3  ;;  %s4320_s1 = sadd.s32 4294967295, %s4083_s6   ;;  %s4083_s6 = sphi %s4275_s6, %s79_s6   ;;  %s4079_s10 = sphi %s4273_s10, %s5706_s10   ;;  %s4075_s5 = sphi %s4271_s5, %s5697_s5   ;;  %s4071_s2 = sphi %s4269_s2, %s5705_s2   ;;  %s4067_s30 = sphi %s4267_s30, %s5696_s30   ;;  %s4063_s9 = sphi %s4265_s9, %s5704_s9   ;;  %s4059_s0 = sphi %s4263_s0, %s5703_s0   ;;  %s4055_s29 = sphi %s4261_s29, %s5694_s29   ;;  %s4051_s4 = sphi %s4259_s4, %s5693_s4   ;;  %s4047_s8 = sphi %s4257_s8, %s5692_s8   ;;  %s4043_s28 = sphi %s4255_s28, %s5702_s28   ;;  %s4039_s7 = sphi %s4253_s7, %s5701_s7   ;;  %s4035_s3 = sphi %s4251_s3, %s5700_s3   ;;  %s4031_s27 = sphi %s4249_s27, %s5689_s27  }
  0x3f   : > { %5555 = sst [smem:[#allocation58_spill]] %s4047_s8  ;;  %s88_s22 = sadd.s32 1, %s4075_s5 }
  0x40   : > { %5556 = sst [smem:[#allocation59_spill]] %s4051_s4  ;;  %s91_s23 = sadd.s32 1, %s4079_s10 }
  0x41   : > { %5557 = sst [smem:[#allocation60_spill]] %s4055_s29  ;;  %p89_p0 = scmp.ge.s32.totalorder %s88_s22, 2 }
  0x42   : > { %5558 = sst [smem:[#allocation61_spill]] %s4059_s0  ;;  %s100_s20 = sadd.s32 1, %s4063_s9 }
  0x43   : > { %5559 = sst [smem:[#allocation62_spill]] %s4067_s30  ;;  %p107_p1 = scmp.ne.s32.totalorder %s4063_s9, %s4059_s0 }
  0x44   : > { %5560 = sst [smem:[#allocation63_spill]] %s4071_s2  ;;  %p108_p2 = scmp.eq.s32.totalorder %s4083_s6, 0 }
  0x45   : > { %5561 = sst [smem:[#allocation64_spill]] %s4075_s5  ;;  %s5708_s22 = smov (%p89_p0, %s88_s22), 0 }
  0x46   : > { %5562 = sst [smem:[#allocation65_spill]] %s4083_s6  ;;  %s5710_s23 = smov (!%p89_p0, %s91_s23), %s4079_s10 }
  0x47   : > { %5563 = sst [smem:[#allocation66_spill]] %s4320_s1  ;;  %s96_s24 = ssub.s32 %s4075_s5, %s5708_s22 }
  0x48   : > { %5564 = sst [smem:[#allocation67_spill]] %s5708_s22  ;;  %p4339_p3 = por %p108_p2, %p107_p1 }
  0x49   : > { %p93_p4 = scmp.ge.s32.totalorder %s5710_s23, 2  ;;  %p5479_p5 = scmp.ne.s32.totalorder %s4059_s0, %s4055_s29 }
  0x4a   : > { %p114_p6 = scmp.eq.s32.totalorder %s4320_s1, 0  ;;  %s358_s18 = sadd.s32 1, %s4051_s4 }
  0x4b   : > { %s5712_s23 = smov (%p93_p4, %s5710_s23), 0  ;;  %p365_p9 = scmp.ne.s32.totalorder %s4051_s4, %s4047_s8 }
  0x4c   : > { %5566 = sst [smem:[#allocation68_spill]] %s5712_s23  ;;  %p4353_p7 = por %p114_p6, %p5479_p5 }
  0x4d   : > { %s95_s26 = ssub.s32 %s4079_s10, %s5712_s23  ;;  %p4367_p10 = por %p365_p9, %p108_p2 }
  0x4e   : > { %s5567_s22 = scalar_select %p4353_p7, 1, 0 }
  0x4f   : > { %s97_s25 = sor.u32 %s96_s24, %s95_s26  ;;  %p371_p11 = scmp.ne.s32.totalorder %s4047_s8, %s4043_s28 }
  0x50   : > { %5568 = sst [smem:[#allocation69_spill]] %s5567_s22  ;;  %p98_p8 = scmp.eq.s32.totalorder %s97_s25, 0 }
  0x51   : > { %s5570_s30 = scalar_select %p4367_p10, 1, 0 }
  0x52   : > { %s4363_s2 = scalar_select %p98_p8, %s4063_s9, %s100_s20  }
  0x53   : > { %p4375_p12 = por %p371_p11, %p114_p6  ;;  %p356_p13 = scmp.eq.s32.totalorder %s95_s26, 0 }
  0x54   : > { %5569 = sst [smem:[#allocation70_spill]] %s4363_s2  ;;  %s698_s23 = sadd.s32 1, %s4039_s7 }
  0x55   : > { %s5571_s24 = scalar_select %p4375_p12, 1, 0 }
  0x56   : > { %s4381_s25 = scalar_select %p356_p13, %s4051_s4, %s358_s18  }
  0x57   : > { %5572 = sst [smem:[#allocation71_spill]] %s5571_s24  ;;  %p705_p0 = scmp.ne.s32.totalorder %s4039_s7, %s4035_s3 }
  0x58   : > { %5573 = sst [smem:[#allocation72_spill]] %s4381_s25  ;;  %p711_p4 = scmp.ne.s32.totalorder %s4035_s3, %s4031_s27 }
  0x59   : > { %p737_p5 = scmp.eq.s32.totalorder %s4320_s1, 3  ;;  %p4390_p8 = por %p705_p0, %p108_p2 }
  0x5a   : > { %p4396_p9 = por %p711_p4, %p114_p6  ;;  %s5580_s18 = sadd.s32 4294967294, %s4083_s6  }
  0x5b   : > { %s5574_s20 = scalar_select %p4390_p8, 1, 0 }
  0x5c   : > { %s5576_s28 = scalar_select %p4396_p9, 1, 0 }
  0x5d   : > { %5575 = sst [smem:[#allocation73_spill]] %s5574_s20  ;;  %p4403_p11 = por %p737_p5, %p107_p1 }
  0x5e   : > { %5577 = sst [smem:[#allocation74_spill]] %s5576_s28  ;;  %p743_p12 = scmp.eq.s32.totalorder %s5580_s18, 3 }
  0x5f   : > { %s5578_s2 = scalar_select %p4403_p11, 1, 0 }
  0x60   : > { %p5581_p7 = scmp.ne.s32.totalorder %s4059_s0, %s4055_s29  ;;  %p2903_p2 = scmp.ge.s32.totalorder %s4083_s6, 4 }
  0x61   : > { %5579 = sst [smem:[#allocation75_spill]] %s5578_s2  ;;  %s5497_s25 = sand.u32 (!%p2903_p2), 1, %s4063_s9  }
  0x62   : > { %p4412_p10 = por %p743_p12, %p5581_p7  ;;  %927 = sbr.rel (%p2903_p2) target bundleno = 494 (0x1ee), region = 16 }
  0x63   : > { %s4417_s27 = scalar_select %p356_p13, %s4039_s7, %s698_s23  }
  0x64   : > { %s5582_s26 = scalar_select %p4412_p10, 1, 0 }
  0x65   : > { %5584 = sst [smem:[#allocation77_spill]] %s4417_s27  ;;  %s2905_s2 = sshll.u32 (!%p2903_p2), %s4079_s10, 1 }
  0x66   : > { %5583 = sst [smem:[#allocation76_spill]] %s5582_s26  ;;  %s4424_s18 = sshll.u32 (!%p2903_p2), %s5497_s25, 3 }
  0x67   : > { %s940_s29 = sadd.s32 %s4075_s5, %s2905_s2  ;;  %s4430_s23 = sand.u32 1, %s4083_s6  }
  0x68   : > { %s4427_s28 = sshll.u32 %s940_s29, 7  ;;  %s5585_s3 = sld [smem:[#allocation79_spill]] }
  0x69   : > { %s955_s8 = scalar_lea.vmem [#allocation5], %s4424_s18  ;;  %s5503_s22 = scalar_lea.sflag [#allocation6], %s4430_s23 }
  0x6a   : > { %s964_s1 = sshll.u32 %s955_s8, 4  ;;  %s4085_s2 = smov [#allocation5]   ;;  %s965_s1 = int_to_ptr.vmem [resolvable:$true] %s964_s1 }
  0x6b   : > { %s3245_s0 = scalar_lea.vmem %s965_s1, 128  ;;  %s3249_s29 = sshll.u32 %s4085_s2, 4  ;;  %s3250_s29 = int_to_ptr.vmem [resolvable:$false] %s3249_s29 }
  0x6c   : > { %p3246_p1 = scmp.ne.s32.totalorder %s965_s1, %s3245_s0  ;;  %s3251_s25 = scalar_lea.vmem %s3250_s29, 256 }
  0x6d   : > { %p3252_p7 = scmp.lt.s32.totalorder %s965_s1, %s3250_s29  ;;  %p3253_p12 = scmp.lt.s32.totalorder %s3251_s25, %s3245_s0 }
  0x6e   : > { %s962_s24 = scalar_lea.hbm %s5585_s3, %s4427_s28  ;;  %p3247_p5 = pnand %p3246_p1, %p4339_p3 }
  0x6f   : > { %p3254_p13 = por %p3253_p12, %p3252_p7 }
  0x70   : > { %p3248_p6 = pneg %p3247_p5 }
  0x72   : > { %p3255_p0 = pnand %p3254_p13, %p3248_p6 }
  0x74   : > { %3258 = shalt.err (!%p3255_p0)
}
  0x75   : > { %3026 = dma.hbm_to_vmem [thread:$0]  (%p4339_p3), %s962_s24, 128, %s965_s1, %s5503_s22  }
  0x76   : > { %s5586_s26 = sld [smem:[#allocation81_spill]]  ;;  %s995_s2 = scalar_lea.vmem [#allocation8], %s4424_s18 }
  0x77   : > { %s1004_s5 = sshll.u32 %s995_s2, 4  ;;  %s5504_s0 = scalar_lea.sflag [#allocation9], %s4430_s23  ;;  %s1005_s5 = int_to_ptr.vmem [resolvable:$true] %s1004_s5 }
  0x78   : > { %s3271_s25 = scalar_lea.vmem %s1005_s5, 128  ;;  %s4086_s29 = smov [#allocation8]  }
  0x79   : > { %p3272_p4 = scmp.ne.s32.totalorder %s1005_s5, %s3271_s25  ;;  %s3275_s6 = sshll.u32 %s4086_s29, 4  ;;  %s3276_s6 = int_to_ptr.vmem [resolvable:$false] %s3275_s6 }
  0x7a   : > { %s3277_s19 = scalar_lea.vmem %s3276_s6, 256  ;;  %p3278_p5 = scmp.lt.s32.totalorder %s1005_s5, %s3276_s6 }
  0x7b   : > { %p3273_p2 = pnand %p3272_p4, %p4339_p3  ;;  %p3279_p6 = scmp.lt.s32.totalorder %s3277_s19, %s3271_s25 }
  0x7c   : > { %s1002_s27 = scalar_lea.hbm %s5586_s26, %s4427_s28 }
  0x7d   : > { %p3274_p1 = pneg %p3273_p2  ;;  %p3280_p7 = por %p3279_p6, %p3278_p5 }
  0x7f   : > { %p3281_p12 = pnand %p3280_p7, %p3274_p1 }
  0x81   : > { %3284 = shalt.err (!%p3281_p12)
}
  0x82   : > { %3028 = dma.hbm_to_vmem [thread:$0]  (%p4339_p3), %s1002_s27, 128, %s1005_s5, %s5504_s0  }
  0x83   : > { %s5587_s3 = sld [smem:[#allocation83_spill]]  ;;  %s1035_s26 = scalar_lea.vmem [#allocation11], %s4424_s18 }
  0x84   : > { %s1044_s2 = sshll.u32 %s1035_s26, 4  ;;  %s5507_s19 = scalar_lea.sflag [#allocation12], %s4430_s23  ;;  %s1045_s2 = int_to_ptr.vmem [resolvable:$true] %s1044_s2 }
  0x85   : > { %s3297_s6 = scalar_lea.vmem %s1045_s2, 128  ;;  %s4087_s25 = smov [#allocation11]  }
  0x86   : > { %p3298_p13 = scmp.ne.s32.totalorder %s1045_s2, %s3297_s6  ;;  %s3301_s29 = sshll.u32 %s4087_s25, 4  ;;  %s3302_s29 = int_to_ptr.vmem [resolvable:$false] %s3301_s29 }
  0x87   : > { %s3303_s22 = scalar_lea.vmem %s3302_s29, 256  ;;  %p3304_p2 = scmp.lt.s32.totalorder %s1045_s2, %s3302_s29 }
  0x88   : > { %p3299_p0 = pnand %p3298_p13, %p4339_p3  ;;  %p3305_p1 = scmp.lt.s32.totalorder %s3303_s22, %s3297_s6 }
  0x89   : > { %s1042_s8 = scalar_lea.hbm %s5587_s3, %s4427_s28 }
  0x8a   : > { %p3300_p4 = pneg %p3299_p0  ;;  %p3306_p5 = por %p3305_p1, %p3304_p2 }
  0x8c   : > { %p3307_p6 = pnand %p3306_p5, %p3300_p4 }
  0x8e   : > { %3310 = shalt.err (!%p3307_p6)
}
  0x8f   : > { %3030 = dma.hbm_to_vmem [thread:$0]  (%p4339_p3), %s1042_s8, 128, %s1045_s2, %s5507_s19  }
  0x90   : > { %s5588_s1 = sld [smem:[#allocation85_spill]]  ;;  %s1075_s3 = scalar_lea.vmem [#allocation14], %s4424_s18 }
  0x91   : > { %s1084_s26 = sshll.u32 %s1075_s3, 4  ;;  %s1113_s22 = sand.u32 1, %s4051_s4   ;;  %s1085_s26 = int_to_ptr.vmem [resolvable:$true] %s1084_s26 }
  0x92   : > { %s5511_s6 = scalar_lea.sflag [#allocation15], %s4430_s23  ;;  %s3323_s25 = scalar_lea.vmem %s1085_s26, 128 }
  0x93   : > { %p3324_p7 = scmp.ne.s32.totalorder %s1085_s26, %s3323_s25  ;;  %s4088_s29 = smov [#allocation14]  }
  0x94   : > { %s3327_s0 = sshll.u32 %s4088_s29, 4  ;;  %s3328_s0 = int_to_ptr.vmem [resolvable:$false] %s3327_s0 }
  0x95   : > { %p3325_p12 = pnand %p3324_p7, %p4339_p3  ;;  %s3329_s20 = scalar_lea.vmem %s3328_s0, 256 }
  0x96   : > { %s1082_s24 = scalar_lea.hbm %s5588_s1, %s4427_s28  ;;  %p3330_p0 = scmp.lt.s32.totalorder %s1085_s26, %s3328_s0 }
  0x97   : > { %p3326_p13 = pneg %p3325_p12  ;;  %p3331_p4 = scmp.lt.s32.totalorder %s3329_s20, %s3323_s25 }
  0x99   : > { %p3332_p2 = por %p3331_p4, %p3330_p0 }
  0x9b   : > { %p3333_p1 = pnand %p3332_p2, %p3326_p13 }
  0x9d   : > { %3336 = shalt.err (!%p3333_p1)
}
  0x9e   : > { %3032 = dma.hbm_to_vmem [thread:$0]  (%p4339_p3), %s1082_s24, 128, %s1085_s26, %s5511_s6  }
  0x9f   : > { %s4481_s8 = sshll.u32 %s1113_s22, 3  ;;  %s5509_s2 = sshll.u32 %s4079_s10, 8 }
  0xa0   : > { %s4486_s5 = sadd.s32 128, %s5509_s2  ;;  %s5589_s27 = sld [smem:[#allocation87_spill]] }
  0xa1   : > { %s1115_s25 = scalar_lea.vmem [#allocation17], %s4481_s8  ;;  %s5512_s19 = scalar_lea.sflag [#allocation18], %s4430_s23 }
  0xa2   : > { %s1127_s29 = sshll.u32 %s1115_s25, 4  ;;  %p5591_p6 = scmp.ne.s32.totalorder %s5570_s30, 0  ;;  %s1128_s29 = int_to_ptr.vmem [resolvable:$true] %s1127_s29 }
  0xa6   : > { %s5590_s1 = smov %s5589_s27  ;;  %s1125_s3 = scalar_lea.hbm %s5589_s27, %s4486_s5 }
  0xa7   : > { %s3337_s4 = scalar_lea.hbm %s1125_s3, 128  ;;  %s3341_s22 = scalar_lea.hbm %s5590_s1, 512 }
  0xa8   : > { %p3338_p5 = scmp.ne.s32.totalorder %s1125_s3, %s3337_s4  ;;  %p3343_p13 = scmp.lt.s32.totalorder %s3341_s22, %s3337_s4 }
  0xaa   : > { %p3339_p7 = pnand %p3338_p5, %p5591_p6 }
  0xac   : > { %p3340_p12 = pneg %p3339_p7 }
  0xae   : > { %p3345_p0 = pnand %p3343_p13, %p3340_p12 }
  0xb0   : > { %3348 = shalt.err (!%p3345_p0)
}
  0xb1   : > { %s3349_s2 = scalar_lea.vmem %s1128_s29, 128  ;;  %s4089_s20 = smov [#allocation17]  }
  0xb2   : > { %p3350_p4 = scmp.ne.s32.totalorder %s1128_s29, %s3349_s2  ;;  %s3353_s0 = sshll.u32 %s4089_s20, 4  ;;  %s3354_s0 = int_to_ptr.vmem [resolvable:$false] %s3353_s0 }
  0xb3   : > { %s3355_s27 = scalar_lea.vmem %s3354_s0, 256  ;;  %p3356_p10 = scmp.lt.s32.totalorder %s1128_s29, %s3354_s0 }
  0xb4   : > { %p3351_p2 = pnand %p3350_p4, %p5591_p6  ;;  %p3357_p5 = scmp.lt.s32.totalorder %s3355_s27, %s3349_s2 }
  0xb6   : > { %p3352_p1 = pneg %p3351_p2  ;;  %p3358_p7 = por %p3357_p5, %p3356_p10 }
  0xb8   : > { %p3359_p11 = pnand %p3358_p7, %p3352_p1 }
  0xba   : > { %3362 = shalt.err (!%p3359_p11)
}
  0xbb   : > { %3034 = dma.hbm_to_vmem [thread:$0]  (%p5591_p6), %s1125_s3, 128, %s1128_s29, %s5512_s19  }
  0xbc   : > { %s5592_s11 = sld [smem:[#allocation89_spill]]  ;;  %s1161_s26 = scalar_lea.vmem [#allocation20], %s4481_s8 }
  0xbd   : > { %s1173_s22 = sshll.u32 %s1161_s26, 4  ;;  %s5513_s2 = scalar_lea.sflag [#allocation21], %s4430_s23  ;;  %s1174_s22 = int_to_ptr.vmem [resolvable:$true] %s1173_s22 }
  0xc2   : > { %s1171_s24 = scalar_lea.hbm %s5592_s11, %s4486_s5  ;;  %s3367_s6 = scalar_lea.hbm %s5592_s11, 512 }
  0xc3   : > { %s3363_s20 = scalar_lea.hbm %s1171_s24, 128 }
  0xc4   : > { %p3364_p10 = scmp.ne.s32.totalorder %s1171_s24, %s3363_s20  ;;  %p3369_p13 = scmp.lt.s32.totalorder %s3367_s6, %s3363_s20 }
  0xc6   : > { %p3365_p11 = pnand %p3364_p10, %p5591_p6 }
  0xc8   : > { %p3366_p12 = pneg %p3365_p11 }
  0xca   : > { %p3371_p0 = pnand %p3369_p13, %p3366_p12 }
  0xcc   : > { %3374 = shalt.err (!%p3371_p0)
}
  0xcd   : > { %s3375_s3 = scalar_lea.vmem %s1174_s22, 128  ;;  %s4090_s29 = smov [#allocation20]  }
  0xce   : > { %p3376_p4 = scmp.ne.s32.totalorder %s1174_s22, %s3375_s3  ;;  %s3379_s4 = sshll.u32 %s4090_s29, 4  ;;  %s3380_s4 = int_to_ptr.vmem [resolvable:$false] %s3379_s4 }
  0xcf   : > { %s3381_s25 = scalar_lea.vmem %s3380_s4, 256  ;;  %p3382_p5 = scmp.lt.s32.totalorder %s1174_s22, %s3380_s4 }
  0xd0   : > { %p3377_p2 = pnand %p3376_p4, %p5591_p6  ;;  %p3383_p7 = scmp.lt.s32.totalorder %s3381_s25, %s3375_s3 }
  0xd2   : > { %p3378_p1 = pneg %p3377_p2  ;;  %p3384_p10 = por %p3383_p7, %p3382_p5 }
  0xd4   : > { %p3385_p11 = pnand %p3384_p10, %p3378_p1 }
  0xd6   : > { %3388 = shalt.err (!%p3385_p11)
}
  0xd7   : > { %3036 = dma.hbm_to_vmem [thread:$0]  (%p5591_p6), %s1171_s24, 128, %s1174_s22, %s5513_s2  }
  0xd8   : > { %s5593_s13 = sld [smem:[#allocation91_spill]]  ;;  %s1207_s0 = scalar_lea.vmem [#allocation23], %s4481_s8 }
  0xd9   : > { %s1219_s27 = sshll.u32 %s1207_s0, 4  ;;  %s5514_s3 = scalar_lea.sflag [#allocation24], %s4430_s23  ;;  %s1220_s27 = int_to_ptr.vmem [resolvable:$true] %s1219_s27 }
  0xde   : > { %s1217_s20 = scalar_lea.hbm %s5593_s13, %s4486_s5  ;;  %s3393_s19 = scalar_lea.hbm %s5593_s13, 512 }
  0xdf   : > { %s3389_s29 = scalar_lea.hbm %s1217_s20, 128 }
  0xe0   : > { %p3390_p12 = scmp.ne.s32.totalorder %s1217_s20, %s3389_s29  ;;  %p3395_p4 = scmp.lt.s32.totalorder %s3393_s19, %s3389_s29 }
  0xe2   : > { %p3391_p13 = pnand %p3390_p12, %p5591_p6 }
  0xe4   : > { %p3392_p0 = pneg %p3391_p13 }
  0xe6   : > { %p3397_p2 = pnand %p3395_p4, %p3392_p0 }
  0xe8   : > { %3400 = shalt.err (!%p3397_p2)
}
  0xe9   : > { %s3401_s24 = scalar_lea.vmem %s1220_s27, 128  ;;  %s4091_s22 = smov [#allocation23]  }
  0xea   : > { %p3402_p1 = scmp.ne.s32.totalorder %s1220_s27, %s3401_s24  ;;  %s3405_s6 = sshll.u32 %s4091_s22, 4  ;;  %s3406_s6 = int_to_ptr.vmem [resolvable:$false] %s3405_s6 }
  0xeb   : > { %s3407_s26 = scalar_lea.vmem %s3406_s6, 256  ;;  %p3408_p10 = scmp.lt.s32.totalorder %s1220_s27, %s3406_s6 }
  0xec   : > { %p3403_p5 = pnand %p3402_p1, %p5591_p6  ;;  %p3409_p11 = scmp.lt.s32.totalorder %s3407_s26, %s3401_s24 }
  0xee   : > { %p3404_p7 = pneg %p3403_p5  ;;  %p3410_p12 = por %p3409_p11, %p3408_p10 }
  0xf0   : > { %p3411_p13 = pnand %p3410_p12, %p3404_p7 }
  0xf2   : > { %3414 = shalt.err (!%p3411_p13)
}
  0xf3   : > { %3038 = dma.hbm_to_vmem [thread:$0]  (%p5591_p6), %s1217_s20, 128, %s1220_s27, %s5514_s3  }
  0xf4   : > { %s5594_s15 = sld [smem:[#allocation93_spill]]  ;;  %s1253_s4 = scalar_lea.vmem [#allocation26], %s4481_s8 }
  0xf5   : > { %s1265_s25 = sshll.u32 %s1253_s4, 4  ;;  %s5515_s24 = scalar_lea.sflag [#allocation27], %s4430_s23  ;;  %s1266_s25 = int_to_ptr.vmem [resolvable:$true] %s1265_s25 }
  0xfa   : > { %s1263_s29 = scalar_lea.hbm %s5594_s15, %s4486_s5  ;;  %s3419_s2 = scalar_lea.hbm %s5594_s15, 512 }
  0xfb   : > { %s3415_s22 = scalar_lea.hbm %s1263_s29, 128 }
  0xfc   : > { %p3416_p0 = scmp.ne.s32.totalorder %s1263_s29, %s3415_s22  ;;  %p3421_p1 = scmp.lt.s32.totalorder %s3419_s2, %s3415_s22 }
  0xfe   : > { %p3417_p4 = pnand %p3416_p0, %p5591_p6 }
 0x100   : > { %p3418_p2 = pneg %p3417_p4 }
 0x102   : > { %p3423_p5 = pnand %p3421_p1, %p3418_p2 }
 0x104   : > { %3426 = shalt.err (!%p3423_p5)
}
 0x105   : > { %s3427_s20 = scalar_lea.vmem %s1266_s25, 128  ;;  %s4092_s27 = smov [#allocation26]  }
 0x106   : > { %p3428_p7 = scmp.ne.s32.totalorder %s1266_s25, %s3427_s20  ;;  %s3431_s19 = sshll.u32 %s4092_s27, 4  ;;  %s3432_s19 = int_to_ptr.vmem [resolvable:$false] %s3431_s19 }
 0x107   : > { %s3433_s0 = scalar_lea.vmem %s3432_s19, 256  ;;  %p3434_p12 = scmp.lt.s32.totalorder %s1266_s25, %s3432_s19 }
 0x108   : > { %p3429_p10 = pnand %p3428_p7, %p5591_p6  ;;  %p3435_p13 = scmp.lt.s32.totalorder %s3433_s0, %s3427_s20 }
 0x10a   : > { %p3430_p11 = pneg %p3429_p10  ;;  %p3436_p0 = por %p3435_p13, %p3434_p12 }
 0x10c   : > { %p3437_p4 = pnand %p3436_p0, %p3430_p11 }
 0x10e   : > { %3440 = shalt.err (!%p3437_p4)
}
 0x10f   : > { %3040 = dma.hbm_to_vmem [thread:$0]  (%p5591_p6), %s1263_s29, 128, %s1266_s25, %s5515_s24  }
 0x110   : > { %s5595_s17 = sld [smem:[#allocation95_spill]]  ;;  %s1299_s6 = scalar_lea.vmem [#allocation29], %s4481_s8 }
 0x111   : > { %s1311_s26 = sshll.u32 %s1299_s6, 4  ;;  %s5517_s20 = scalar_lea.sflag [#allocation30], %s4430_s23  ;;  %s1312_s26 = int_to_ptr.vmem [resolvable:$true] %s1311_s26 }
 0x116   : > { %s1309_s22 = scalar_lea.hbm %s5595_s17, %s4486_s5  ;;  %s3445_s3 = scalar_lea.hbm %s5595_s17, 512 }
 0x117   : > { %s3441_s27 = scalar_lea.hbm %s1309_s22, 128 }
 0x118   : > { %p3442_p2 = scmp.ne.s32.totalorder %s1309_s22, %s3441_s27  ;;  %p3447_p7 = scmp.lt.s32.totalorder %s3445_s3, %s3441_s27 }
 0x11a   : > { %p3443_p1 = pnand %p3442_p2, %p5591_p6 }
 0x11c   : > { %p3444_p5 = pneg %p3443_p1 }
 0x11e   : > { %p3449_p10 = pnand %p3447_p7, %p3444_p5 }
 0x120   : > { %3452 = shalt.err (!%p3449_p10)
}
 0x121   : > { %s3453_s29 = scalar_lea.vmem %s1312_s26, 128  ;;  %s4093_s25 = smov [#allocation29]  }
 0x122   : > { %p3454_p11 = scmp.ne.s32.totalorder %s1312_s26, %s3453_s29  ;;  %s3457_s2 = sshll.u32 %s4093_s25, 4  ;;  %s3458_s2 = int_to_ptr.vmem [resolvable:$false] %s3457_s2 }
 0x123   : > { %s3459_s4 = scalar_lea.vmem %s3458_s2, 256  ;;  %p3460_p0 = scmp.lt.s32.totalorder %s1312_s26, %s3458_s2 }
 0x124   : > { %p3455_p12 = pnand %p3454_p11, %p5591_p6  ;;  %p3461_p4 = scmp.lt.s32.totalorder %s3459_s4, %s3453_s29 }
 0x126   : > { %p3456_p13 = pneg %p3455_p12  ;;  %p3462_p2 = por %p3461_p4, %p3460_p0 }
 0x128   : > { %p3463_p1 = pnand %p3462_p2, %p3456_p13 }
 0x12a   : > { %3466 = shalt.err (!%p3463_p1)
}
 0x12b   : > { %3042 = dma.hbm_to_vmem [thread:$0]  (%p5591_p6), %s1309_s22, 128, %s1312_s26, %s5517_s20  }
 0x12c   : > { %s5596_s27 = sld [smem:[#allocation78_spill]]  ;;  %s935_s0 = scalar_lea.vmem [#allocation2], %s4424_s18 }
 0x12d   : > { %s944_s25 = sshll.u32 %s935_s0, 4  ;;  %s5597_s4 = sld [smem:[#allocation80_spill]]  ;;  %s945_s25 = int_to_ptr.vmem [resolvable:$true] %s944_s25 }
 0x12e   : > { %s5599_s11 = sand.u32 1, %s4063_s9   ;;  %s3479_s15 = scalar_lea.vmem %s945_s25, 128 }
 0x12f   : > { %s932_s13 = scalar_lea.sflag [#allocation3], %s5599_s11  ;;  %p3480_p5 = scmp.ne.s32.totalorder %s945_s25, %s3479_s15 }
 0x130   : > { %s4094_s17 = smov [#allocation2]  }
 0x131   : > { %p3481_p7 = pnand %p3480_p5, %p4339_p3  ;;  %s3483_s22 = sshll.u32 %s4094_s17, 4  ;;  %s3484_s22 = int_to_ptr.vmem [resolvable:$false] %s3483_s22 }
 0x132   : > { %s942_s19 = scalar_lea.hbm %s5596_s27, %s4427_s28  ;;  %s3485_s26 = scalar_lea.vmem %s3484_s22, 256 }
 0x133   : > { %s982_s1 = scalar_lea.hbm %s5597_s4, %s4427_s28  ;;  %p3482_p10 = pneg %p3481_p7 }
 0x134   : > { %p3486_p11 = scmp.lt.s32.totalorder %s945_s25, %s3484_s22  ;;  %p3487_p12 = scmp.lt.s32.totalorder %s3485_s26, %s3479_s15 }
 0x136   : > { %p3488_p13 = por %p3487_p12, %p3486_p11 }
 0x138   : > { %p3489_p0 = pnand %p3488_p13, %p3482_p10 }
 0x13a   : > { %3492 = shalt.err (!%p3489_p0)
}
 0x13b   : > { %3025 = dma.hbm_to_vmem [thread:$0]  (%p4339_p3), %s942_s19, 128, %s945_s25, %s932_s13  }
 0x13c   : > { %s975_s11 = scalar_lea.vmem [#allocation7], %s4424_s18  ;;  %s5600_s0 = sld [smem:[#allocation82_spill]] }
 0x13d   : > { %s984_s3 = sshll.u32 %s975_s11, 4  ;;  %s4095_s15 = smov [#allocation7]   ;;  %s985_s3 = int_to_ptr.vmem [resolvable:$true] %s984_s3 }
 0x13e   : > { %s3505_s29 = scalar_lea.vmem %s985_s3, 128  ;;  %s3509_s2 = sshll.u32 %s4095_s15, 4  ;;  %s3510_s2 = int_to_ptr.vmem [resolvable:$false] %s3509_s2 }
 0x13f   : > { %p3506_p4 = scmp.ne.s32.totalorder %s985_s3, %s3505_s29  ;;  %s3511_s4 = scalar_lea.vmem %s3510_s2, 256 }
 0x140   : > { %p3512_p5 = scmp.lt.s32.totalorder %s985_s3, %s3510_s2  ;;  %p3513_p7 = scmp.lt.s32.totalorder %s3511_s4, %s3505_s29 }
 0x141   : > { %p3507_p2 = pnand %p3506_p4, %p4339_p3 }
 0x142   : > { %s1022_s17 = scalar_lea.hbm %s5600_s0, %s4427_s28  ;;  %p3514_p10 = por %p3513_p7, %p3512_p5 }
 0x143   : > { %p3508_p1 = pneg %p3507_p2 }
 0x145   : > { %p3515_p11 = pnand %p3514_p10, %p3508_p1 }
 0x147   : > { %3518 = shalt.err (!%p3515_p11)
}
 0x148   : > { %s5602_s13 = scalar_lea.sflag [#allocation6], %s4430_s23  ;;  %s1015_s22 = scalar_lea.vmem [#allocation10], %s4424_s18 }
 0x149   : > { %3027 = dma.hbm_to_vmem [thread:$0]  (%p4339_p3), %s982_s1, 128, %s985_s3, %s5602_s13  }
 0x14a   : > { %s1024_s26 = sshll.u32 %s1015_s22, 4  ;;  %s5603_s27 = sld [smem:[#allocation84_spill]]  ;;  %s1025_s26 = int_to_ptr.vmem [resolvable:$true] %s1024_s26 }
 0x14b   : > { %s3531_s29 = scalar_lea.vmem %s1025_s26, 128  ;;  %s4096_s2 = smov [#allocation10]  }
 0x14c   : > { %p3532_p12 = scmp.ne.s32.totalorder %s1025_s26, %s3531_s29  ;;  %s3535_s4 = sshll.u32 %s4096_s2, 4  ;;  %s3536_s4 = int_to_ptr.vmem [resolvable:$false] %s3535_s4 }
 0x14d   : > { %s3537_s19 = scalar_lea.vmem %s3536_s4, 256  ;;  %p3538_p4 = scmp.lt.s32.totalorder %s1025_s26, %s3536_s4 }
 0x14e   : > { %p3533_p13 = pnand %p3532_p12, %p4339_p3  ;;  %p3539_p2 = scmp.lt.s32.totalorder %s3537_s19, %s3531_s29 }
 0x150   : > { %s1062_s0 = scalar_lea.hbm %s5603_s27, %s4427_s28  ;;  %p3534_p0 = pneg %p3533_p13 }
 0x151   : > { %p3540_p1 = por %p3539_p2, %p3538_p4 }
 0x153   : > { %p3541_p5 = pnand %p3540_p1, %p3534_p0 }
 0x155   : > { %3544 = shalt.err (!%p3541_p5)
}
 0x156   : > { %s5605_s1 = scalar_lea.sflag [#allocation9], %s4430_s23  ;;  %s1055_s25 = scalar_lea.vmem [#allocation13], %s4424_s18 }
 0x157   : > { %3029 = dma.hbm_to_vmem [thread:$0]  (%p4339_p3), %s1022_s17, 128, %s1025_s26, %s5605_s1  }
 0x158   : > { %s1064_s22 = sshll.u32 %s1055_s25, 4  ;;  %s5606_s27 = sld [smem:[#allocation86_spill]]  ;;  %s1065_s22 = int_to_ptr.vmem [resolvable:$true] %s1064_s22 }
 0x159   : > { %s3557_s2 = scalar_lea.vmem %s1065_s22, 128  ;;  %s4097_s4 = smov [#allocation13]  }
 0x15a   : > { %p3558_p7 = scmp.ne.s32.totalorder %s1065_s22, %s3557_s2  ;;  %s3561_s3 = sshll.u32 %s4097_s4, 4  ;;  %s3562_s3 = int_to_ptr.vmem [resolvable:$false] %s3561_s3 }
 0x15b   : > { %s3563_s13 = scalar_lea.vmem %s3562_s3, 256  ;;  %p3564_p12 = scmp.lt.s32.totalorder %s1065_s22, %s3562_s3 }
 0x15c   : > { %p3559_p10 = pnand %p3558_p7, %p4339_p3  ;;  %p3565_p13 = scmp.lt.s32.totalorder %s3563_s13, %s3557_s2 }
 0x15e   : > { %s5607_s19 = smov %s5606_s27  ;;  %p3560_p11 = pneg %p3559_p10 }
 0x15f   : > { %p3566_p0 = por %p3565_p13, %p3564_p12 }
 0x161   : > { %p3567_p4 = pnand %p3566_p0, %p3560_p11 }
 0x163   : > { %3570 = shalt.err (!%p3567_p4)
}
 0x164   : > { %s5608_s17 = scalar_lea.sflag [#allocation12], %s4430_s23  ;;  %s1095_s25 = scalar_lea.vmem [#allocation16], %s4424_s18 }
 0x165   : > { %3031 = dma.hbm_to_vmem [thread:$0]  (%p4339_p3), %s1062_s0, 128, %s1065_s22, %s5608_s17  }
 0x166   : > { %s1104_s11 = sshll.u32 %s1095_s25, 4  ;;  %s5609_s2 = sld [smem:[#allocation88_spill]]  ;;  %s1105_s11 = int_to_ptr.vmem [resolvable:$true] %s1104_s11 }
 0x167   : > { %s3583_s3 = scalar_lea.vmem %s1105_s11, 128  ;;  %s4098_s26 = smov [#allocation16]  }
 0x168   : > { %p3584_p2 = scmp.ne.s32.totalorder %s1105_s11, %s3583_s3  ;;  %s3587_s1 = sshll.u32 %s4098_s26, 4  ;;  %s3588_s1 = int_to_ptr.vmem [resolvable:$false] %s3587_s1 }
 0x169   : > { %s3589_s29 = scalar_lea.vmem %s3588_s1, 256  ;;  %p3590_p7 = scmp.lt.s32.totalorder %s1105_s11, %s3588_s1 }
 0x16a   : > { %p3585_p1 = pnand %p3584_p2, %p4339_p3  ;;  %p3591_p10 = scmp.lt.s32.totalorder %s3589_s29, %s3583_s3 }
 0x16c   : > { %s5610_s13 = smov %s5609_s2  ;;  %s4641_s4 = scalar_lea.hbm %s5609_s2, %s4486_s5 }
 0x16d   : > { %p3586_p5 = pneg %p3585_p1  ;;  %p3592_p11 = por %p3591_p10, %p3590_p7 }
 0x16f   : > { %p3593_p12 = pnand %p3592_p11, %p3586_p5 }
 0x171   : > { %3596 = shalt.err (!%p3593_p12)
}
 0x172   : > { %s5611_s18 = scalar_lea.sflag [#allocation15], %s4430_s23  ;;  %s5612_s17 = scalar_lea.hbm %s5607_s19, %s4427_s28 }
 0x173   : > { %3033 = dma.hbm_to_vmem [thread:$0]  (%p4339_p3), %s5612_s17, 128, %s1105_s11, %s5611_s18  }
 0x174   : > { %s1138_s25 = scalar_lea.vmem [#allocation19], %s4481_s8  ;;  %s5613_s12 = sld [smem:[#allocation90_spill]] }
 0x175   : > { %s1150_s29 = sshll.u32 %s1138_s25, 4  ;;  %s3597_s2 = scalar_lea.hbm %s4641_s4, 128  ;;  %s1151_s29 = int_to_ptr.vmem [resolvable:$true] %s1150_s29 }
 0x176   : > { %p3598_p13 = scmp.ne.s32.totalorder %s4641_s4, %s3597_s2  ;;  %s3601_s26 = scalar_lea.hbm %s5610_s13, 512 }
 0x177   : > { %p3603_p2 = scmp.lt.s32.totalorder %s3601_s26, %s3597_s2 }
 0x178   : > { %p3599_p0 = pnand %p3598_p13, %p5591_p6 }
 0x17a   : > { %s4659_s21 = scalar_lea.hbm %s5613_s12, %s4486_s5  ;;  %p3600_p4 = pneg %p3599_p0 }
 0x17c   : > { %p3605_p1 = pnand %p3603_p2, %p3600_p4 }
 0x17e   : > { %3608 = shalt.err (!%p3605_p1)
}
 0x17f   : > { %s3609_s11 = scalar_lea.vmem %s1151_s29, 128  ;;  %s4099_s1 = smov [#allocation19]  }
 0x180   : > { %p3610_p3 = scmp.ne.s32.totalorder %s1151_s29, %s3609_s11  ;;  %s3613_s18 = sshll.u32 %s4099_s1, 4  ;;  %s3614_s18 = int_to_ptr.vmem [resolvable:$false] %s3613_s18 }
 0x181   : > { %s3615_s0 = scalar_lea.vmem %s3614_s18, 256  ;;  %p3616_p10 = scmp.lt.s32.totalorder %s1151_s29, %s3614_s18 }
 0x182   : > { %p3611_p5 = pnand %p3610_p3, %p5591_p6  ;;  %p3617_p11 = scmp.lt.s32.totalorder %s3615_s0, %s3609_s11 }
 0x184   : > { %p3612_p7 = pneg %p3611_p5  ;;  %p3618_p12 = por %p3617_p11, %p3616_p10 }
 0x186   : > { %p3619_p13 = pnand %p3618_p12, %p3612_p7 }
 0x188   : > { %3622 = shalt.err (!%p3619_p13)
}
 0x189   : > { %s5614_s22 = scalar_lea.sflag [#allocation18], %s4430_s23  ;;  %s1184_s17 = scalar_lea.vmem [#allocation22], %s4481_s8 }
 0x18a   : > { %3035 = dma.hbm_to_vmem [thread:$0]  (%p5591_p6), %s4641_s4, 128, %s1151_s29, %s5614_s22  }
 0x18b   : > { %s1196_s25 = sshll.u32 %s1184_s17, 4  ;;  %s5615_s14 = sld [smem:[#allocation92_spill]]  ;;  %s1197_s25 = int_to_ptr.vmem [resolvable:$true] %s1196_s25 }
 0x18c   : > { %s3623_s28 = scalar_lea.hbm %s4659_s21, 128  ;;  %s3627_s11 = scalar_lea.hbm %s5613_s12, 512 }
 0x18d   : > { %p3624_p0 = scmp.ne.s32.totalorder %s4659_s21, %s3623_s28  ;;  %p3629_p1 = scmp.lt.s32.totalorder %s3627_s11, %s3623_s28 }
 0x18f   : > { %p3625_p4 = pnand %p3624_p0, %p5591_p6 }
 0x191   : > { %s4680_s2 = scalar_lea.hbm %s5615_s14, %s4486_s5  ;;  %p3626_p2 = pneg %p3625_p4 }
 0x193   : > { %p3631_p3 = pnand %p3629_p1, %p3626_p2 }
 0x195   : > { %3634 = shalt.err (!%p3631_p3)
}
 0x196   : > { %s3635_s4 = scalar_lea.vmem %s1197_s25, 128  ;;  %s4100_s29 = smov [#allocation22]  }
 0x197   : > { %p3636_p5 = scmp.ne.s32.totalorder %s1197_s25, %s3635_s4  ;;  %s3639_s1 = sshll.u32 %s4100_s29, 4  ;;  %s3640_s1 = int_to_ptr.vmem [resolvable:$false] %s3639_s1 }
 0x198   : > { %s3641_s18 = scalar_lea.vmem %s3640_s1, 256  ;;  %p3642_p11 = scmp.lt.s32.totalorder %s1197_s25, %s3640_s1 }
 0x199   : > { %p3637_p7 = pnand %p3636_p5, %p5591_p6  ;;  %p3643_p12 = scmp.lt.s32.totalorder %s3641_s18, %s3635_s4 }
 0x19b   : > { %p3638_p10 = pneg %p3637_p7  ;;  %p3644_p13 = por %p3643_p12, %p3642_p11 }
 0x19d   : > { %p3645_p0 = pnand %p3644_p13, %p3638_p10 }
 0x19f   : > { %3648 = shalt.err (!%p3645_p0)
}
 0x1a0   : > { %s5616_s0 = scalar_lea.sflag [#allocation21], %s4430_s23  ;;  %s1230_s22 = scalar_lea.vmem [#allocation25], %s4481_s8 }
 0x1a1   : > { %3037 = dma.hbm_to_vmem [thread:$0]  (%p5591_p6), %s4659_s21, 128, %s1197_s25, %s5616_s0  }
 0x1a2   : > { %s1242_s17 = sshll.u32 %s1230_s22, 4  ;;  %s5617_s16 = sld [smem:[#allocation94_spill]]  ;;  %s1243_s17 = int_to_ptr.vmem [resolvable:$true] %s1242_s17 }
 0x1a3   : > { %s3649_s3 = scalar_lea.hbm %s4680_s2, 128  ;;  %s3653_s4 = scalar_lea.hbm %s5615_s14, 512 }
 0x1a4   : > { %p3650_p4 = scmp.ne.s32.totalorder %s4680_s2, %s3649_s3  ;;  %p3655_p3 = scmp.lt.s32.totalorder %s3653_s4, %s3649_s3 }
 0x1a6   : > { %p3651_p2 = pnand %p3650_p4, %p5591_p6 }
 0x1a8   : > { %s4701_s28 = scalar_lea.hbm %s5617_s16, %s4486_s5  ;;  %p3652_p1 = pneg %p3651_p2 }
 0x1aa   : > { %p3657_p5 = pnand %p3655_p3, %p3652_p1 }
 0x1ac   : > { %3660 = shalt.err (!%p3657_p5)
}
 0x1ad   : > { %s3661_s21 = scalar_lea.vmem %s1243_s17, 128  ;;  %s4101_s5 = smov [#allocation25]  }
 0x1ae   : > { %p3662_p7 = scmp.ne.s32.totalorder %s1243_s17, %s3661_s21  ;;  %s3665_s25 = sshll.u32 %s4101_s5, 4  ;;  %s3666_s25 = int_to_ptr.vmem [resolvable:$false] %s3665_s25 }
 0x1af   : > { %s3667_s29 = scalar_lea.vmem %s3666_s25, 256  ;;  %p3668_p12 = scmp.lt.s32.totalorder %s1243_s17, %s3666_s25 }
 0x1b0   : > { %p3663_p10 = pnand %p3662_p7, %p5591_p6  ;;  %p3669_p13 = scmp.lt.s32.totalorder %s3667_s29, %s3661_s21 }
 0x1b2   : > { %p3664_p11 = pneg %p3663_p10  ;;  %p3670_p0 = por %p3669_p13, %p3668_p12 }
 0x1b4   : > { %p3671_p4 = pnand %p3670_p0, %p3664_p11 }
 0x1b6   : > { %3674 = shalt.err (!%p3671_p4)
}
 0x1b7   : > { %s5618_s1 = scalar_lea.sflag [#allocation24], %s4430_s23  ;;  %s1276_s18 = scalar_lea.vmem [#allocation28], %s4481_s8 }
 0x1b8   : > { %3039 = dma.hbm_to_vmem [thread:$0]  (%p5591_p6), %s4680_s2, 128, %s1243_s17, %s5618_s1  }
 0x1b9   : > { %s1288_s0 = sshll.u32 %s1276_s18, 4  ;;  %s1337_s22 = sand.u32 1, %s4039_s7   ;;  %s1289_s0 = int_to_ptr.vmem [resolvable:$true] %s1288_s0 }
 0x1ba   : > { %s2958_s6 = sshll.u32 %s1337_s22, 3  ;;  %s3675_s27 = scalar_lea.hbm %s4701_s28, 128 }
 0x1bb   : > { %p3676_p2 = scmp.ne.s32.totalorder %s4701_s28, %s3675_s27  ;;  %s3679_s11 = scalar_lea.hbm %s5617_s16, 512 }
 0x1bc   : > { %p3681_p5 = scmp.lt.s32.totalorder %s3679_s11, %s3675_s27 }
 0x1bd   : > { %p3677_p1 = pnand %p3676_p2, %p5591_p6 }
 0x1bf   : > { %p3678_p3 = pneg %p3677_p1 }
 0x1c1   : > { %p3683_p7 = pnand %p3681_p5, %p3678_p3 }
 0x1c3   : > { %3686 = shalt.err (!%p3683_p7)
}
 0x1c4   : > { %s3687_s4 = scalar_lea.vmem %s1289_s0, 128  ;;  %s4102_s8 = smov [#allocation28]  }
 0x1c5   : > { %p3688_p10 = scmp.ne.s32.totalorder %s1289_s0, %s3687_s4  ;;  %s3691_s2 = sshll.u32 %s4102_s8, 4  ;;  %s3692_s2 = int_to_ptr.vmem [resolvable:$false] %s3691_s2 }
 0x1c6   : > { %s3693_s17 = scalar_lea.vmem %s3692_s2, 256  ;;  %p3694_p13 = scmp.lt.s32.totalorder %s1289_s0, %s3692_s2 }
 0x1c7   : > { %p3689_p11 = pnand %p3688_p10, %p5591_p6  ;;  %p3695_p0 = scmp.lt.s32.totalorder %s3693_s17, %s3687_s4 }
 0x1c9   : > { %p3690_p12 = pneg %p3689_p11  ;;  %p3696_p4 = por %p3695_p0, %p3694_p13 }
 0x1cb   : > { %p3697_p2 = pnand %p3696_p4, %p3690_p12 }
 0x1cd   : > { %3700 = shalt.err (!%p3697_p2)
}
 0x1ce   : > { %s5619_s21 = scalar_lea.sflag [#allocation27], %s4430_s23  ;;  %s1339_s25 = scalar_lea.vmem [#allocation31], %s2958_s6 }
 0x1cf   : > { %3041 = dma.hbm_to_vmem [thread:$0]  (%p5591_p6), %s4701_s28, 128, %s1289_s0, %s5619_s21  }
 0x1d0   : > { %s1351_s29 = sshll.u32 %s1339_s25, 4  ;;  %s5621_s1 = sshll.u32 %s4079_s10, 8  ;;  %s1352_s29 = int_to_ptr.vmem [resolvable:$true] %s1351_s29 }
 0x1d1   : > { %s5622_s27 = sld [smem:[#allocation97_spill]] }
 0x1d7   : > { %s5623_s26 = smov %s5622_s27  ;;  %s1349_s3 = scalar_lea.hbm %s5622_s27, %s5621_s1 }
 0x1d8   : > { %s3701_s11 = scalar_lea.hbm %s1349_s3, 128  ;;  %p3706_p7 = scmp.lt.s32.totalorder %s1349_s3, %s5623_s26 }
 0x1d9   : > { %p3702_p1 = scmp.ne.s32.totalorder %s1349_s3, %s3701_s11 }
 0x1db   : > { %p3703_p3 = pnand %p3702_p1, %p4390_p8 }
 0x1dd   : > { %p3704_p5 = pneg %p3703_p3 }
 0x1df   : > { %p3709_p10 = pnand %p3706_p7, %p3704_p5 }
 0x1e1   : > { %3712 = shalt.err (!%p3709_p10)
}
 0x1e2   : > { %s3713_s28 = scalar_lea.vmem %s1352_s29, 128  ;;  %s4103_s0 = smov [#allocation31]  }
 0x1e3   : > { %p3714_p6 = scmp.ne.s32.totalorder %s1352_s29, %s3713_s28  ;;  %s3717_s6 = sshll.u32 %s4103_s0, 4  ;;  %s3718_s6 = int_to_ptr.vmem [resolvable:$false] %s3717_s6 }
 0x1e4   : > { %s3719_s8 = scalar_lea.vmem %s3718_s6, 256  ;;  %p3720_p13 = scmp.lt.s32.totalorder %s1352_s29, %s3718_s6 }
 0x1e5   : > { %p3715_p11 = pnand %p3714_p6, %p4390_p8  ;;  %p3721_p0 = scmp.lt.s32.totalorder %s3719_s8, %s3713_s28 }
 0x1e7   : > { %p3716_p12 = pneg %p3715_p11  ;;  %p3722_p4 = por %p3721_p0, %p3720_p13 }
 0x1e9   : > { %p3723_p2 = pnand %p3722_p4, %p3716_p12 }
 0x1eb   : > { %3726 = shalt.err (!%p3723_p2)
}
 0x1ec   : > { %s5624_s2 = scalar_lea.sflag [#allocation30], %s4430_s23 }
 0x1ed   : > { %3043 = dma.hbm_to_vmem [thread:$0]  (%p4390_p8), %s1349_s3, 128, %s1352_s29, %s5624_s2  }
 0x1ee PF: > { %s5625_s17 = sld [smem:[#allocation65_spill]] }
 0x1f4   : > { %p2962_p1 = scmp.ge.s32.totalorder %s5625_s17, 1  ;;  %p1356_p3 = scmp.lt.s32.totalorder %s5625_s17, 5 }
 0x1f6   : > { %p1357_p5 = pnand %p2962_p1, %p1356_p3 }
 0x1f7   : > { %s5626_s21 = sld [smem:[#allocation61_spill]] (!%p1357_p5) }
 0x1f8   : > { %1360 = sbr.rel (%p1357_p5) target bundleno = 957 (0x3bd), region = 100  ;;  %s5627_s25 = sld [smem:[#allocation69_spill]] (!%p1357_p5) }
 0x1fd   : > { %s4752_s1 = sand.u32 1, %s5626_s21  }
 0x1fe   : > { %s4755_s18 = sshll.u32 %s4752_s1, 3  ;;  %s1363_s5 = scalar_lea.sflag [#allocation3], %s4752_s1 }
 0x1ff   : > { %p5628_p7 = scmp.ne.s32.totalorder %s5627_s25, 0 }
 0x201   : > { %3966 = dma.done.wait (%p5628_p7), %s1363_s5, 128  }
 0x202   : > { %3968 = vsyncadd (%p5628_p7), %s1363_s5, 4294967168  ;;  %s5629_s23 = sld [smem:[#allocation66_spill]] }
 0x208   : > { %s4764_s29 = sand.u32 1, %s5629_s23  }
 0x209   : > { %s1372_s27 = scalar_lea.sflag [#allocation6], %s4764_s29 }
 0x20a   : > { %3970 = dma.done.wait (%p5628_p7), %s1372_s27, 256  }
 0x20b   : > { %3972 = vsyncadd (%p5628_p7), %s1372_s27, 4294967040  ;;  %s1390_s30 = scalar_lea.sflag [#allocation9], %s4764_s29 }
 0x20c   : > { %3974 = dma.done.wait (%p5628_p7), %s1390_s30, 256  }
 0x20d   : > { %3976 = vsyncadd (%p5628_p7), %s1390_s30, 4294967040  ;;  %s1408_s0 = scalar_lea.sflag [#allocation12], %s4764_s29  ;;  %s1411_s6 = scalar_lea.vmem [#allocation11], %s4755_s18 }
 0x20e   : > { %3978 = dma.done.wait (%p5628_p7), %s1408_s0, 256  }
 0x20f   : > { %3980 = vsyncadd (%p5628_p7), %s1408_s0, 4294967040  ;;  %s1420_s8 = scalar_lea.vmem [#allocation13], %s4755_s18  ;;  %s1426_s2 = scalar_lea.sflag [#allocation15], %s4764_s29 }
 0x210   : > { %s1429_s17 = scalar_lea.vmem [#allocation14], %s4755_s18 }
 0x211   : > { %3982 = dma.done.wait (%p5628_p7), %s1426_s2, 256  }
 0x212   : > { %3984 = vsyncadd (%p5628_p7), %s1426_s2, 4294967040  ;;  %s5630_s21 = sld [smem:[#allocation58_spill]]  ;;  %s1444_s0 = scalar_lea.sflag [#allocation18], %s4764_s29 }
 0x213   : > { %s5631_s5 = sld [smem:[#allocation71_spill]] }
 0x218   : > { %s1445_s23 = sand.u32 1, %s5630_s21  }
 0x219   : > { %s4794_s27 = sshll.u32 %s1445_s23, 3  ;;  %p5632_p8 = scmp.ne.s32.totalorder %s5631_s5, 0 }
 0x21b   : > { %3986 = dma.done.wait (%p5632_p8), %s1444_s0, 256  }
 0x21c   : > { %3988 = vsyncadd (%p5632_p8), %s1444_s0, 4294967040  ;;  %s1462_s2 = scalar_lea.sflag [#allocation21], %s4764_s29 }
 0x21d   : > { %3990 = dma.done.wait (%p5632_p8), %s1462_s2, 256  }
 0x21e   : > { %3992 = vsyncadd (%p5632_p8), %s1462_s2, 4294967040  ;;  %s1480_s23 = scalar_lea.sflag [#allocation24], %s4764_s29 }
 0x21f   : > { %3994 = dma.done.wait (%p5632_p8), %s1480_s23, 256  }
 0x220   : > { %3996 = vsyncadd (%p5632_p8), %s1480_s23, 4294967040  ;;  %s1492_s0 = scalar_lea.vmem [#allocation25], %s4794_s27  ;;  %s1498_s22 = scalar_lea.sflag [#allocation27], %s4764_s29 }
 0x221   : > { %s1501_s11 = scalar_lea.vmem [#allocation26], %s4794_s27 }
 0x222   : > { %3998 = dma.done.wait (%p5632_p8), %s1498_s22, 256  }
 0x223   : > { %4000 = vsyncadd (%p5632_p8), %s1498_s22, 4294967040  ;;  %s1510_s2 = scalar_lea.vmem [#allocation28], %s4794_s27  ;;  %s1516_s21 = scalar_lea.sflag [#allocation30], %s4764_s29 }
 0x224   : > { %4002 = dma.done.wait (%p5632_p8), %s1516_s21, 128  }
 0x225   : > { %4004 = vsyncadd (%p5632_p8), %s1516_s21, 4294967168  ;;  %s5633_s23 = sld [smem:[#allocation57_spill]] }
 0x22b   : > { %s1526_s28 = sand.u32 1, %s5633_s23  }
 0x22c   : > { %s4832_s3 = sshll.u32 %s1526_s28, 3 }
 0x22d   : > { %s1528_s30 = scalar_lea.vmem [#allocation31], %s4832_s3 }
 0x22e   : > { %4006 = dma.done.wait (%p4396_p9), %s1516_s21, 128  }
 0x22f   : > { %4008 = vsyncadd (%p4396_p9), %s1516_s21, 4294967168  ;;  %s5635_s22 = sld [smem:[#allocation62_spill]]  ;;  %v1782_v0 = vlaneseq  ;;  %v4846_v3 = vld [vmem:[%s1492_s0] sm:$0xff]  ;;  %v4850_v4 = vld [vmem:[%s1411_s6] sm:$0xff]  ;;  %s4104_s4 = smov 1   ;;  %vm4105_vm3 = vmmov 1  }
 0x230   : > { %1939 = vrot.lane.b32.xlu1 %v4846_v3, %s4104_s4  ;;  %1852 = vrot.lane.b32.xlu0 %v4850_v4, %s4104_s4  ;;  %v4856_v5 = vld [vmem:[%s1420_s8] sm:$0xff]  ;;  %v4862_v7 = vld [vmem:[%s1429_s17] sm:$0xff]  ;;  %s5637_s6 = scalar_lea.vmem [#allocation16], %s4755_s18  ;;  %s5638_s8 = scalar_lea.vmem [#allocation29], %s4794_s27 }
 0x231   : > { %v4843_v1 = vshrl.u32 %v1782_v0, 7  ;;  %v4858_v6 = vld [vmem:[%s1510_s2] sm:$0xff]  ;;  %s5639_s17 = scalar_lea.vmem [#allocation23], %s4794_s27  ;;  %s5640_s21 = scalar_lea.vmem [#allocation10], %s4755_s18  ;;  %v1829_v49 = vrot.slane %v4856_v5, 7  ;;  %v4999_v54 = vand.u32 127, %v1782_v0 }
 0x232   : > { %v4877_v11 = vld [vmem:[%s5637_s6] sm:$0xff]  ;;  %v4891_v15 = vld [vmem:[%s5639_s17] sm:$0xff]  ;;  %s5641_s0 = scalar_lea.vmem [#allocation17], %s4794_s27  ;;  %s5642_s2 = scalar_lea.vmem [#allocation19], %s4794_s27 }
 0x233   : > { %v1926_v2 = vsub.s32 7, %v4843_v1  ;;  %v4895_v16 = vld [vmem:[%s5640_s21] sm:$0xff]  ;;  %v4900_v17 = vld [vmem:[%s5641_s0] sm:$0xff]  ;;  %v1897_v19 = vmax.f32 %v4891_v15, 1e-12  ;;  %s5643_s23 = scalar_lea.vmem [#allocation20], %s4794_s27 }
 0x234   : > { %1950 = vrot.lane.b32.xlu1 %v4858_v6, %s4104_s4  ;;  %1865 = vrot.lane.b32.xlu0 %v4862_v7, %s4104_s4  ;;  %v4904_v18 = vld [vmem:[%s5642_s2] sm:$0xff]  ;;  %v4909_v20 = vld [vmem:[%s5643_s23] sm:$0xff]  ;;  %s5644_s4 = scalar_lea.vmem [#allocation22], %s4794_s27  ;;  %v1805_v23 = vmax.f32 %v4895_v16, 1e-12  ;;  %s5647_s17 = scalar_lea.vmem [#allocation7], %s4755_s18 }
 0x235   : > { %s2997_s5 = sshll.u32 %s5635_s22, 3  ;;  %v4865_v8 = vrot.slane %v4856_v5, %v1926_v2  ;;  %v4880_v12 = vrot.slane %v4877_v11, %v1926_v2  ;;  %v4913_v21 = vld [vmem:[%s5644_s4] sm:$0xff]  ;;  %s5648_s21 = scalar_lea.vmem [#allocation8], %s4755_s18  ;;  %v1882_v27 = vmul.f32 %v4909_v20, %v4900_v17  ;;  %3221 = vrcp.f32 %v1897_v19 }
 0x236   : > { %s1876_s25 = sadd.s32 8, %s2997_s5  ;;  %v4926_v25 = vld [vmem:[%s5647_s17] sm:$0xff]  ;;  %v4930_v26 = vld [vmem:[%s5648_s21] sm:$0xff]  ;;  %v1884_v28 = vmul.f32 %v4913_v21, %v4904_v18  ;;  %3223 = vrcp.f32 %v1805_v23  ;;  %v4942_v31 = vmul.f32 0.045, %v4891_v15  ;;  %v1786_v38 = vstv %s2997_s5  ;;  %s4106_s3 = smov 127  }
 0x237   : > { %p1918_p10 = scmp.eq.s32.totalorder %s1876_s25, 15  ;;  %s5636_s25 = sld [smem:[#allocation63_spill]]  ;;  %v4946_v33 = vmul.f32 0.045, %v4895_v16  ;;  %v4963_v41 = vadd.s32 %v1786_v38, %v4843_v1  ;;  %vm1826_vm7 = vcmp.eq.s32.totalorder %v4843_v1, 0  ;;  %v1840_v19 = vrot.slane %v4877_v11, 7 }
 0x238   : > { %v1885_v32 = vadd.f32 %v1884_v28, %v1882_v27  ;;  %v1888_v35 = vsub.f32 0.0, %v4942_v31  ;;  %v1900_v50 = vmul.f32 0.045, %v4900_v17  ;;  %v1902_v51 = vmul.f32 -0.045, %v4900_v17  ;;  %s5666_s5 = sld [smem:[#allocation75_spill]] }
 0x239   : > { %s3216_s28 = scalar_select %p1918_p10, 0, 255  ;;  %v1796_v37 = vsub.f32 0.0, %v4946_v33  ;;  %vm1788_vm9 = vcmp.eq.s32.totalorder %v4963_v41, 0  ;;  %vm1894_vm11 = vcmp.gt.f32.partialorder %v4891_v15, 1e-12 }
 0x23a   : > { %v1886_v36 = vadd.f32 1e-12, %v1885_v32  ;;  %vm1789_vm12 = vcmp.eq.s32.totalorder %v4963_v41, 15  ;;  %vm1802_vm14 = vcmp.gt.f32.partialorder %v4895_v16, 1e-12 }
 0x23b   : > { %v4871_v9 = vld [vmem:[%s1501_s11] sm:%s3216_s28]  ;;  %s2989_s11 = sadd.s32 4294967295, %s5635_s22  ;;  %v1908_v61 = vmul.f32 0.045, %v4904_v18  ;;  %v2999_v62 = vld [vmem:[%s1528_s30 + $0x7] ss:$0 sm:$0xff] }
 0x23c   : > { %v1928_v10 = vsub.f32 %v4871_v9, %v4865_v8  ;;  %v4884_v13 = vld [vmem:[%s5638_s8] sm:%s3216_s28]  ;;  %p1756_p9 = scmp.gt.s32.totalorder %s2989_s11, 0  ;;  %p2990_p11 = scmp.lt.s32.totalorder %s2989_s11, 1  ;;  %vm4954_vm0 = vcmp.lt.f32.partialorder %v1886_v36, %v1888_v35  ;;  %vm1890_vm1 = vcmp.gt.f32.partialorder %v1886_v36, %v4942_v31  ;;  %v1896_v45 = vsub.f32 0.0, %v1886_v36 }
 0x23d   : > { %v1935_v14 = vsub.f32 %v4884_v13, %v4880_v12  ;;  %p1758_p6 = scmp.lt.s32.totalorder %s5636_s25, 1  ;;  %s5645_s28 = scalar_lea.vmem [#allocation2], %s4755_s18  ;;  %vm4973_vm4 = vmxor %vm4954_vm0, %vm4105_vm3  ;;  %v1901_v63 = vsel %vm4954_vm0, %v1900_v50, 0.0  ;;  %v1903_v0 = vsel %vm1890_vm1, %v1902_v51, 0.0  ;;  %v1910_v2 = vmul.f32 -0.045, %v4904_v18 }
 0x23e   : > { %v4917_v22 = vld [vmem:[%s5645_s28] sm:$0xff]  ;;  %s1757_s6 = scalar_select %p1756_p9, %s2989_s11, 0  ;;  %vm4983_vm6 = vmxor %vm1890_vm1, %vm4105_vm3  ;;  %v1904_v35 = vadd.f32 %v1903_v0, %v1901_v63  ;;  %v1847_v44 = vsel %vm1826_vm7, %v2999_v62, %v1840_v19 }
 0x23f   : > { %s5646_s8 = scalar_lea.vmem [#allocation5], %s4755_s18  ;;  %v1790_v29 = vmul.f32 %v4926_v25, %v4917_v22  ;;  %s5651_s28 = sld [smem:[#allocation96_spill]]  ;;  %v1808_v56 = vmul.f32 0.045, %v4917_v22  ;;  %v1810_v57 = vmul.f32 -0.045, %v4917_v22  ;;  %vm1893_vm13 = vmand %vm4973_vm4, %vm4983_vm6 }
 0x240   : > { %v4922_v24 = vld [vmem:[%s5646_s8] sm:$0xff]  ;;  %s1759_s0 = scalar_select %p1758_p6, %s5636_s25, 1  ;;  %vm1848_vm4 = vcmp.eq.s32.totalorder %v4999_v54, 15  ;;  %v1871_v48 = vsel %vm1788_vm9, 0.0, %v1847_v44 }
 0x241   : > { %v1792_v30 = vmul.f32 %v4930_v26, %v4922_v24  ;;  %s5714_s6 = smov (!%p2990_p11, %s1757_s6), 1  ;;  %v1816_v28 = vmul.f32 0.045, %v4922_v24  ;;  %v1937_v36 = vsel %vm1848_vm4, 0.0, %v4846_v3  ;;  %v1863_v62 = vsel %vm1848_vm4, 0.0, %v4862_v7  ;;  %s1720_s30 = scalar_lea.vmem [#allocation39], %s4755_s18 }
 0x242   : > { %s2995_s27 = sshll.u32 %s1759_s0, 1  ;;  %v3222_v43 = vpop.eup %3221  ;;  %s3007_s17 = sshll.u32 %s5636_s25, 1 }
 0x243   : > { %v1793_v34 = vadd.f32 %v1792_v30, %v1790_v29  ;;  %s1763_s2 = sadd.s32 %s5714_s6, %s2995_s27  ;;  %v3224_v47 = vpop.eup %3223  ;;  %v1899_v58 = vmul.f32 %v3222_v43, %v1896_v45  ;;  %v1818_v29 = vmul.f32 -0.045, %v4922_v24  ;;  %s5518_s6 = scalar_lea.vmem [#allocation41], %s4755_s18 }
 0x244   : > { %s2996_s23 = sshll.u32 %s1763_s2, 3  ;;  %s2081_s21 = sadd.s32 %s5635_s22, %s3007_s17 }
 0x245   : > { %v4952_v39 = vadd.f32 1e-12, %v1793_v34  ;;  %s1765_s8 = scalar_lea.vmem %s5651_s28, %s2996_s23  ;;  %v1905_v32 = vmul.f32 %v1899_v58, %v4900_v17  ;;  %v1909_v17 = vsel %vm4954_vm0, %v1908_v61, 0.0  ;;  %v1913_v45 = vmul.f32 %v1899_v58, %v4904_v18  ;;  %s5144_s0 = sshll.u32 %s2081_s21, 7 }
 0x246   : > { %v2998_v52 = vld [vmem:[%s1765_s8 + $0x7] ss:$0 sm:$0xff]  ;;  %vm1850_vm0 = vcmp.eq.s32.totalorder %v4999_v54, 0  ;;  %s5667_s23 = sld [smem:[#allocation103_spill]]  ;;  %s2160_s4 = sshll.u32 %s1720_s30, 4  ;;  %s2161_s4 = int_to_ptr.vmem [resolvable:$true] %s2160_s4 }
 0x247   : > { %vm4966_vm2 = vcmp.lt.f32.partialorder %v4952_v39, %v1796_v37  ;;  %vm1798_vm5 = vcmp.gt.f32.partialorder %v4952_v39, %v4946_v33  ;;  %v1804_v46 = vsub.f32 0.0, %v4952_v39  ;;  %v1837_v60 = vsel %vm1826_vm7, %v2998_v52, %v1829_v49  ;;  %s5520_s28 = scalar_lea.sflag [#allocation40], %s4764_s29  ;;  %s3727_s8 = scalar_lea.vmem %s2161_s4, 128 }
 0x248   : > { %vm4994_vm8 = vmxor %vm4966_vm2, %vm4105_vm3  ;;  %v1809_v23 = vsel %vm4966_vm2, %v1808_v56, 0.0  ;;  %v1811_v27 = vsel %vm1798_vm5, %v1810_v57, 0.0  ;;  %v1857_v37 = vsel %vm1789_vm12, 0.0, %v4856_v5  ;;  %v1858_v38 = vsel %vm1788_vm9, 0.0, %v1837_v60  ;;  %p3728_p12 = scmp.ne.s32.totalorder %s2161_s4, %s3727_s8  ;;  %p5668_p13 = scmp.ne.s32.totalorder %s5666_s5, 0 }
 0x249   : > { %vm5006_vm10 = vmxor %vm1798_vm5, %vm4105_vm3  ;;  %v1807_v59 = vmul.f32 %v3224_v47, %v1804_v46  ;;  %v1812_v43 = vadd.f32 %v1811_v27, %v1809_v23  ;;  %v1817_v46 = vsel %vm4966_vm2, %v1816_v28, 0.0  ;;  %v1819_v16 = vsel %vm1798_vm5, %v1818_v29, 0.0 }
 0x24a   : > { %vm1801_vm15 = vmand %vm4994_vm8, %vm5006_vm10  ;;  %v1859_v18 = vsub.f32 %v1857_v37, %v1858_v38  ;;  %v1849_v33 = vsel %vm1848_vm4, 0.0, %v4850_v4  ;;  %v1820_v49 = vadd.f32 %v1819_v16, %v1817_v46  ;;  %v1948_v60 = vsel %vm1848_vm4, 0.0, %v4858_v6  ;;  %p3729_p0 = pnand %p3728_p12, %p5668_p13 }
 0x24b   : > { %vm5043_vm3 = vmand %vm1893_vm13, %vm1894_vm11  ;;  %v1813_v34 = vmul.f32 %v1807_v59, %v4917_v22  ;;  %v1911_v22 = vsel %vm1890_vm1, %v1910_v2, 0.0  ;;  %v1821_v47 = vmul.f32 %v1807_v59, %v4922_v24  ;;  %v1870_v24 = vsel %vm1789_vm12, 0.0, %v4877_v11 }
 0x24c   : > { %vm5057_vm6 = vmand %vm1801_vm15, %vm1802_vm14  ;;  %v1906_v40 = vsel %vm5043_vm3, %v1905_v32, 0.0  ;;  %v1912_v42 = vadd.f32 %v1911_v22, %v1909_v17  ;;  %v1914_v53 = vsel %vm5043_vm3, %v1913_v45, 0.0  ;;  %v1872_v63 = vsub.f32 %v1870_v24, %v1871_v48  ;;  %s2158_s11 = scalar_lea.hbm %s5667_s23, %s5144_s0  ;;  %p3730_p4 = pneg %p3729_p0 }
 0x24d   : > { %v1814_v31 = vsel %vm5057_vm6, %v1813_v34, 0.0  ;;  %v1907_v51 = vadd.f32 %v1906_v40, %v1904_v35  ;;  %v1822_v55 = vsel %vm5057_vm6, %v1821_v47, 0.0  ;;  %v1966_v6 = vsub.s32 0, %v4843_v1 }
 0x24e   : > { %v1815_v3 = vadd.f32 %v1814_v31, %v1812_v43  ;;  %v1915_v61 = vadd.f32 %v1914_v53, %v1912_v42  ;;  %v1823_v0 = vadd.f32 %v1822_v55, %v1820_v49  ;;  %vm1958_vm1 = vcmp.eq.s32.totalorder %v4843_v1, 7 }
 0x24f   : > { %v1916_v2 = vadd.f32 %v1907_v51, %v4909_v20 }
 0x250   : > { %v1824_v23 = vadd.f32 %v1815_v3, %v4926_v25  ;;  %v1917_v8 = vadd.f32 %v1915_v61, %v4913_v21  ;;  %v1825_v9 = vadd.f32 %v1823_v0, %v4930_v26 }
 0x2a2   : > { %v1940_v50 = vpop.permute.xlu1 %1939  ;;  %v1853_v52 = vpop.permute.xlu0 %1852 }
 0x2a3   : > { %v1942_v56 = vsel %vm1850_vm0, 0.0, %v1940_v50  ;;  %v1855_v57 = vsel %vm1850_vm0, 0.0, %v1853_v52 }
 0x2a4   : > { %v1943_v58 = vsub.f32 %v1937_v36, %v1942_v56  ;;  %v1856_v59 = vsub.f32 %v1849_v33, %v1855_v57 }
 0x2a6   : > { %v1944_v19 = vadd.f32 %v1943_v58, %v1928_v10  ;;  %v1860_v27 = vadd.f32 %v1859_v18, %v1856_v59  ;;  %v1951_v28 = vpop.permute.xlu1 %1950  ;;  %v1866_v29 = vpop.permute.xlu0 %1865 }
 0x2a7   : > { %v1953_v30 = vsel %vm1850_vm0, 0.0, %v1951_v28  ;;  %v1868_v32 = vsel %vm1850_vm0, 0.0, %v1866_v29 }
 0x2a8   : > { %v1945_v34 = vmul.f32 0.3, %v1944_v19  ;;  %v1861_v35 = vmul.f32 0.3, %v1860_v27  ;;  %v1954_v20 = vsub.f32 %v1948_v60, %v1953_v30  ;;  %v1869_v37 = vsub.f32 %v1863_v62, %v1868_v32 }
 0x2aa   : > { %v1946_v10 = vadd.f32 %v1945_v34, %v1916_v2  ;;  %v5116_v25 = vadd.f32 %v1861_v35, %v1824_v23  ;;  %v1955_v38 = vadd.f32 %v1954_v20, %v1935_v14  ;;  %v1873_v15 = vadd.f32 %v1872_v63, %v1869_v37 }
 0x2ac   : > { %v1967_v43 = vrot.slane %v1946_v10, %v1966_v6  ;;  %v1956_v17 = vmul.f32 0.3, %v1955_v38  ;;  %v1874_v22 = vmul.f32 0.3, %v1873_v15  ;;  %1978 = vrot.lane.b32.xlu0 %v5116_v25, %s4106_s3  ;;  %v1960_v21 = vrot.slane %v5116_v25, 1  ;;  %2037 = vst [vmem:[%s1720_s30] sm:$0xff] %v5116_v25 }
 0x2ae   : > { %v1957_v12 = vadd.f32 %v1956_v17, %v1917_v8  ;;  %v5126_v13 = vadd.f32 %v1874_v22, %v1825_v9  ;;  %v5130_v14 = vsel %vm1958_vm1, %v1967_v43, %v1960_v21 }
 0x2b0   : > { %v1976_v26 = vrot.slane %v1957_v12, %v1966_v6  ;;  %1983 = vrot.lane.b32.xlu1 %v5126_v13, %s4106_s3  ;;  %v1970_v44 = vrot.slane %v5126_v13, 1  ;;  %2038 = vst [vmem:[%s5518_s6] sm:$0xff] %v5126_v13  ;;  %s4107_s3 = smov [#allocation39]  }
 0x2b1   : > { %s3731_s6 = sshll.u32 %s4107_s3, 4  ;;  %s3732_s6 = int_to_ptr.vmem [resolvable:$false] %s3731_s6 }
 0x2b2   : > { %v5140_v45 = vsel %vm1958_vm1, %v1976_v26, %v1970_v44  ;;  %s3733_s25 = scalar_lea.vmem %s3732_s6, 256  ;;  %p3734_p2 = scmp.lt.s32.totalorder %s2161_s4, %s3732_s6 }
 0x2b3   : > { %p3735_p1 = scmp.lt.s32.totalorder %s3733_s25, %s3727_s8 }
 0x2b5   : > { %p3736_p3 = por %p3735_p1, %p3734_p2 }
 0x2b7   : > { %p3737_p5 = pnand %p3736_p3, %p3730_p4 }
 0x2b9   : > { %3740 = shalt.err (!%p3737_p5)
}
 0x2ba   : > { %s3741_s22 = scalar_lea.hbm %s2158_s11, 128  ;;  %s3745_s21 = scalar_lea.hbm %s5667_s23, 512 }
 0x2bb   : > { %p3742_p7 = scmp.ne.s32.totalorder %s2158_s11, %s3741_s22  ;;  %p3746_p9 = scmp.lt.s32.totalorder %s2158_s11, %s5667_s23 }
 0x2bc   : > { %p3747_p6 = scmp.lt.s32.totalorder %s3745_s21, %s3741_s22 }
 0x2bd   : > { %p3743_p8 = pnand %p3742_p7, %p5668_p13 }
 0x2be   : > { %p3748_p11 = por %p3747_p6, %p3746_p9 }
 0x2bf   : > { %p3744_p10 = pneg %p3743_p8 }
 0x2c1   : > { %p3749_p12 = pnand %p3748_p11, %p3744_p10 }
 0x2c3   : > { %3752 = shalt.err (!%p3749_p12)
}
 0x2c4   : > { %3068 = dma.vmem_to_hbm [thread:$0]  (%p5668_p13), %s2161_s4, 128, %s2158_s11, %s5520_s28  }
 0x2c5   : > { %s5519_s6 = scalar_lea.vmem [#allocation38], %s4755_s18  ;;  %s5669_s25 = sld [smem:[#allocation104_spill]] }
 0x2c6   : > { %2036 = vst [vmem:[%s5519_s6] sm:$0xff] %v4952_v39  ;;  %s5670_s30 = scalar_lea.vmem [#allocation41], %s4755_s18  ;;  %s4108_s27 = smov [#allocation41]  }
 0x2c7   : > { %s2175_s17 = sshll.u32 %s5670_s30, 4  ;;  %s3757_s2 = sshll.u32 %s4108_s27, 4  ;;  %s2176_s17 = int_to_ptr.vmem [resolvable:$true] %s2175_s17  ;;  %s3758_s2 = int_to_ptr.vmem [resolvable:$false] %s3757_s2 }
 0x2c8   : > { %s3753_s21 = scalar_lea.vmem %s2176_s17, 128  ;;  %s3759_s11 = scalar_lea.vmem %s3758_s2, 256 }
 0x2c9   : > { %p3754_p0 = scmp.ne.s32.totalorder %s2176_s17, %s3753_s21  ;;  %p3760_p1 = scmp.lt.s32.totalorder %s2176_s17, %s3758_s2 }
 0x2ca   : > { %p3761_p3 = scmp.lt.s32.totalorder %s3759_s11, %s3753_s21 }
 0x2cb   : > { %s2173_s22 = scalar_lea.hbm %s5669_s25, %s5144_s0  ;;  %p3755_p4 = pnand %p3754_p0, %p5668_p13 }
 0x2cc   : > { %p3762_p5 = por %p3761_p3, %p3760_p1 }
 0x2cd   : > { %p3756_p2 = pneg %p3755_p4 }
 0x2cf   : > { %p3763_p7 = pnand %p3762_p5, %p3756_p2 }
 0x2d1   : > { %3766 = shalt.err (!%p3763_p7)
}
 0x2d2   : > { %s3767_s4 = scalar_lea.hbm %s2173_s22, 128  ;;  %s3771_s30 = scalar_lea.hbm %s5669_s25, 512 }
 0x2d3   : > { %p3768_p8 = scmp.ne.s32.totalorder %s2173_s22, %s3767_s4  ;;  %p3772_p6 = scmp.lt.s32.totalorder %s2173_s22, %s5669_s25 }
 0x2d4   : > { %p3773_p11 = scmp.lt.s32.totalorder %s3771_s30, %s3767_s4 }
 0x2d5   : > { %p3769_p10 = pnand %p3768_p8, %p5668_p13 }
 0x2d6   : > { %p3774_p12 = por %p3773_p11, %p3772_p6 }
 0x2d7   : > { %p3770_p9 = pneg %p3769_p10 }
 0x2d9   : > { %p3775_p0 = pnand %p3774_p12, %p3770_p9 }
 0x2db   : > { %3778 = shalt.err (!%p3775_p0)
}
 0x2dc   : > { %s5671_s21 = scalar_lea.sflag [#allocation40], %s4764_s29  ;;  %v1988_v1 = vsub.f32 %v5130_v14, %v5116_v25  ;;  %v1990_v47 = vsub.f32 %v5140_v45, %v5126_v13  ;;  %s1692_s28 = scalar_lea.vmem [#allocation33], %s4755_s18 }
 0x2dd   : > { %3069 = dma.vmem_to_hbm [thread:$0]  (%p5668_p13), %s2176_s17, 128, %s2173_s22, %s5671_s21  }
 0x2de   : > { %v1989_v16 = vsel %vm1789_vm12, 0.0, %v1988_v1  ;;  %v1991_v24 = vsel %vm1789_vm12, 0.0, %v1990_v47  ;;  %s2100_s6 = sshll.u32 %s1692_s28, 4  ;;  %s5672_s27 = sld [smem:[#allocation99_spill]]  ;;  %s5212_s6 = int_to_ptr.vmem [resolvable:$true] %s2100_s6 }
 0x2df   : > { %v1993_v36 = vmul.f32 %v1989_v16, %v1989_v16  ;;  %v2004_v51 = vmul.f32 %v1991_v24, %v1991_v24  ;;  %v2024_v23 = vmul.f32 2.5, %v1989_v16  ;;  %s1685_s4 = scalar_lea.vmem [#allocation32], %s4755_s18  ;;  %v2032_v30 = vmul.f32 2.5, %v1991_v24  ;;  %s5523_s3 = scalar_lea.vmem [#allocation36], %s4755_s18 }
 0x2e0   : > { %s2085_s8 = sshll.u32 %s1685_s4, 4  ;;  %s5218_s30 = sshll.u32 %s5523_s3, 4  ;;  %s5226_s8 = int_to_ptr.vmem [resolvable:$true] %s2085_s8  ;;  %s5290_s30 = int_to_ptr.vmem [resolvable:$true] %s5218_s30 }
 0x2e1   : > { %v2025_v28 = vadd.f32 %v2024_v23, %v4856_v5  ;;  %s5674_s17 = sld [smem:[#allocation98_spill]]  ;;  %s5524_s12 = scalar_lea.vmem [#allocation35], %s4755_s18  ;;  %v2033_v5 = vadd.f32 %v2032_v30, %v4877_v11 }
 0x2e2   : > { %s5231_s13 = sshll.u32 %s5524_s12, 4  ;;  %s5675_s14 = scalar_lea.vmem [#allocation38], %s4755_s18  ;;  %s5299_s13 = int_to_ptr.vmem [resolvable:$true] %s5231_s13 }
 0x2e3   : > { %s5235_s15 = sshll.u32 %s5675_s14, 4  ;;  %s3779_s21 = scalar_lea.vmem %s5212_s6, 128  ;;  %s5312_s15 = int_to_ptr.vmem [resolvable:$true] %s5235_s15 }
 0x2e4   : > { %s5673_s11 = smov %s5672_s27  ;;  %s5208_s2 = scalar_lea.hbm %s5672_s27, %s5144_s0 }
 0x2e5   : > { %p3780_p4 = scmp.ne.s32.totalorder %s5212_s6, %s3779_s21 }
 0x2e7   : > { %s5224_s27 = scalar_lea.hbm %s5674_s17, %s5144_s0  ;;  %p3781_p2 = pnand %p3780_p4, %p5668_p13 }
 0x2e9   : > { %p3782_p1 = pneg %p3781_p2 }
 0x31e   : > { %v1979_v39 = vpop.permute.xlu0 %1978 }
 0x31f   : > { %v1981_v46 = vsub.f32 %v1979_v39, %v5116_v25 }
 0x321   : > { %v1982_v40 = vsel %vm1848_vm4, 0.0, %v1981_v46 }
 0x322   : > { %v1992_v31 = vmul.f32 %v1982_v40, %v1982_v40  ;;  %v1984_v18 = vpop.permute.xlu1 %1983  ;;  %v2020_v19 = vmul.f32 2.5, %v1982_v40 }
 0x323   : > { %v1986_v33 = vsub.f32 %v1984_v18, %v5126_v13 }
 0x324   : > { %v1994_v42 = vadd.f32 %v1993_v36, %v1992_v31  ;;  %v2021_v27 = vadd.f32 %v2020_v19, %v4850_v4 }
 0x325   : > { %v1987_v48 = vsel %vm1848_vm4, 0.0, %v1986_v33 }
 0x326   : > { %v1995_v49 = vadd.f32 1e-12, %v1994_v42  ;;  %v2003_v50 = vmul.f32 %v1987_v48, %v1987_v48  ;;  %v2028_v6 = vmul.f32 2.5, %v1987_v48 }
 0x328   : > { %3225 = vrsqrt.f32 %v1995_v49  ;;  %v2005_v52 = vadd.f32 %v2004_v51, %v2003_v50  ;;  %vm1998_vm2 = vcmp.eq.f32.partialorder %v1995_v49, inf  ;;  %v2001_v56 = vand.u32 2147483648, %v1995_v49 }
 0x329   : > { %vm2000_vm5 = vcmp.eq.f32.partialorder %v1995_v49, 0.0  ;;  %v2029_v4 = vadd.f32 %v2028_v6, %v4862_v7 }
 0x32a   : > { %v2006_v3 = vadd.f32 1e-12, %v2005_v52 }
 0x32c   : > { %3227 = vrsqrt.f32 %v2006_v3  ;;  %vm2009_vm7 = vcmp.eq.f32.partialorder %v2006_v3, inf  ;;  %v2012_v61 = vand.u32 2147483648, %v2006_v3  ;;  %vm2011_vm8 = vcmp.eq.f32.partialorder %v2006_v3, 0.0 }
 0x335   : > { %v3226_v53 = vpop.eup %3225 }
 0x336   : > { %v1997_v55 = vmul.f32 %v3226_v53, %v1995_v49 }
 0x338   : > { %v1999_v57 = vsel %vm1998_vm2, %v1995_v49, %v1997_v55 }
 0x339   : > { %v2002_v58 = vsel %vm2000_vm5, %v2001_v56, %v1999_v57  ;;  %v3228_v41 = vpop.eup %3227 }
 0x33a   : > { %v2014_v59 = vmul.f32 2.5, %v2002_v58  ;;  %v2008_v54 = vmul.f32 %v3228_v41, %v2006_v3 }
 0x33c   : > { %v2015_v60 = vadd.f32 1.0, %v2014_v59  ;;  %v2010_v62 = vsel %vm2009_vm7, %v2006_v3, %v2008_v54 }
 0x33d   : > { %v2013_v63 = vsel %vm2011_vm8, %v2012_v61, %v2010_v62 }
 0x33e   : > { %3229 = vrcp.f32 %v2015_v60  ;;  %v2017_v0 = vmul.f32 2.5, %v2013_v63 }
 0x340   : > { %v2018_v2 = vadd.f32 1.0, %v2017_v0 }
 0x342   : > { %3231 = vrcp.f32 %v2018_v2 }
 0x34b   : > { %v3230_v29 = vpop.eup %3229 }
 0x34c   : > { %v2022_v32 = vmul.f32 %v3230_v29, %v2021_v27  ;;  %v2026_v34 = vmul.f32 %v3230_v29, %v2025_v28 }
 0x34e   : > { %2027 = vst [vmem:[%s1692_s28] sm:$0xff] %v2026_v34  ;;  %2023 = vst [vmem:[%s1685_s4] sm:$0xff] %v2022_v32  ;;  %s4109_s28 = smov [#allocation33]  }
 0x34f   : > { %s3783_s22 = sshll.u32 %s4109_s28, 4  ;;  %s3784_s22 = int_to_ptr.vmem [resolvable:$false] %s3783_s22 }
 0x350   : > { %s3785_s4 = scalar_lea.vmem %s3784_s22, 256  ;;  %p3786_p3 = scmp.lt.s32.totalorder %s5212_s6, %s3784_s22 }
 0x351   : > { %p3787_p5 = scmp.lt.s32.totalorder %s3785_s4, %s3779_s21 }
 0x353   : > { %p3788_p7 = por %p3787_p5, %p3786_p3 }
 0x355   : > { %p3789_p8 = pnand %p3788_p7, %p3782_p1 }
 0x357   : > { %3792 = shalt.err (!%p3789_p8)
}
 0x358   : > { %s3793_s14 = scalar_lea.hbm %s5208_s2, 128  ;;  %s3797_s28 = scalar_lea.hbm %s5673_s11, 512 }
 0x359   : > { %p3794_p10 = scmp.ne.s32.totalorder %s5208_s2, %s3793_s14  ;;  %p3798_p11 = scmp.lt.s32.totalorder %s5208_s2, %s5673_s11 }
 0x35a   : > { %p3799_p12 = scmp.lt.s32.totalorder %s3797_s28, %s3793_s14 }
 0x35b   : > { %p3795_p9 = pnand %p3794_p10, %p5668_p13 }
 0x35c   : > { %p3800_p0 = por %p3799_p12, %p3798_p11 }
 0x35d   : > { %p3796_p6 = pneg %p3795_p9 }
 0x35f   : > { %p3801_p4 = pnand %p3800_p0, %p3796_p6 }
 0x361   : > { %3804 = shalt.err (!%p3801_p4)
}
 0x362   : > { %s5676_s21 = scalar_lea.sflag [#allocation34], %s4764_s29  ;;  %v3232_v7 = vpop.eup %3231  ;;  %s2040_s12 = scalar_lea.sflag [#allocation4], %s4752_s1 }
 0x363   : > { %3064 = dma.vmem_to_hbm [thread:$0]  (%p5668_p13), %s5212_s6, 128, %s5208_s2, %s5676_s21  }
 0x364   : > { %s3805_s16 = scalar_lea.vmem %s5226_s8, 128  ;;  %s4110_s19 = smov [#allocation32]  }
 0x365   : > { %p3806_p2 = scmp.ne.s32.totalorder %s5226_s8, %s3805_s16  ;;  %s3809_s3 = sshll.u32 %s4110_s19, 4  ;;  %s3810_s3 = int_to_ptr.vmem [resolvable:$false] %s3809_s3 }
 0x366   : > { %s3811_s22 = scalar_lea.vmem %s3810_s3, 256  ;;  %p3812_p5 = scmp.lt.s32.totalorder %s5226_s8, %s3810_s3 }
 0x367   : > { %p3807_p1 = pnand %p3806_p2, %p5668_p13  ;;  %p3813_p7 = scmp.lt.s32.totalorder %s3811_s22, %s3805_s16 }
 0x369   : > { %p3808_p3 = pneg %p3807_p1  ;;  %p3814_p8 = por %p3813_p7, %p3812_p5 }
 0x36b   : > { %p3815_p10 = pnand %p3814_p8, %p3808_p3 }
 0x36d   : > { %3818 = shalt.err (!%p3815_p10)
}
 0x36e   : > { %s3819_s6 = scalar_lea.hbm %s5224_s27, 128  ;;  %s3823_s4 = scalar_lea.hbm %s5674_s17, 512 }
 0x36f   : > { %p3820_p9 = scmp.ne.s32.totalorder %s5224_s27, %s3819_s6  ;;  %p3824_p12 = scmp.lt.s32.totalorder %s5224_s27, %s5674_s17 }
 0x370   : > { %p3825_p0 = scmp.lt.s32.totalorder %s3823_s4, %s3819_s6 }
 0x371   : > { %p3821_p6 = pnand %p3820_p9, %p5668_p13 }
 0x372   : > { %p3826_p4 = por %p3825_p0, %p3824_p12 }
 0x373   : > { %p3822_p11 = pneg %p3821_p6 }
 0x375   : > { %p3827_p2 = pnand %p3826_p4, %p3822_p11 }
 0x377   : > { %3830 = shalt.err (!%p3827_p2)
}
 0x378   : > { %3063 = dma.vmem_to_hbm [thread:$0]  (%p5668_p13), %s5226_s8, 128, %s5224_s27, %s2040_s12   ;;  %v2030_v11 = vmul.f32 %v3232_v7, %v2029_v4  ;;  %v2034_v35 = vmul.f32 %v3232_v7, %v2033_v5 }
 0x379   : > { %s5677_s19 = sld [smem:[#allocation101_spill]]  ;;  %s5679_s8 = scalar_lea.vmem [#allocation36], %s4755_s18 }
 0x37a   : > { %s5678_s1 = sld [smem:[#allocation100_spill]]  ;;  %2035 = vst [vmem:[%s5679_s8] sm:$0xff] %v2034_v35  ;;  %s5680_s27 = scalar_lea.vmem [#allocation35], %s4755_s18 }
 0x37b   : > { %2031 = vst [vmem:[%s5680_s27] sm:$0xff] %v2030_v11  ;;  %s5681_s14 = sld [smem:[#allocation102_spill]]  ;;  %s2055_s21 = scalar_lea.sflag [#allocation37], %s4764_s29 }
 0x37c   : > { %s3831_s16 = scalar_lea.vmem %s5290_s30, 128  ;;  %s4111_s22 = smov [#allocation36]  }
 0x37d   : > { %p3832_p1 = scmp.ne.s32.totalorder %s5290_s30, %s3831_s16  ;;  %s3835_s6 = sshll.u32 %s4111_s22, 4  ;;  %s3836_s6 = int_to_ptr.vmem [resolvable:$false] %s3835_s6 }
 0x37e   : > { %s3837_s11 = scalar_lea.vmem %s3836_s6, 256  ;;  %p3838_p7 = scmp.lt.s32.totalorder %s5290_s30, %s3836_s6 }
 0x37f   : > { %s5287_s3 = scalar_lea.hbm %s5677_s19, %s5144_s0  ;;  %p3833_p3 = pnand %p3832_p1, %p5668_p13 }
 0x380   : > { %s5296_s2 = scalar_lea.hbm %s5678_s1, %s5144_s0  ;;  %p3839_p8 = scmp.lt.s32.totalorder %s3837_s11, %s3831_s16 }
 0x381   : > { %s5309_s28 = scalar_lea.hbm %s5681_s14, %s5144_s0  ;;  %p3834_p5 = pneg %p3833_p3 }
 0x382   : > { %p3840_p10 = por %p3839_p8, %p3838_p7 }
 0x384   : > { %p3841_p9 = pnand %p3840_p10, %p3834_p5 }
 0x386   : > { %3844 = shalt.err (!%p3841_p9)
}
 0x387   : > { %s3845_s18 = scalar_lea.hbm %s5287_s3, 128  ;;  %s3849_s27 = scalar_lea.hbm %s5677_s19, 512 }
 0x388   : > { %p3846_p6 = scmp.ne.s32.totalorder %s5287_s3, %s3845_s18  ;;  %p3850_p0 = scmp.lt.s32.totalorder %s5287_s3, %s5677_s19 }
 0x389   : > { %p3851_p4 = scmp.lt.s32.totalorder %s3849_s27, %s3845_s18 }
 0x38a   : > { %p3847_p11 = pnand %p3846_p6, %p5668_p13 }
 0x38b   : > { %p3852_p2 = por %p3851_p4, %p3850_p0 }
 0x38c   : > { %p3848_p12 = pneg %p3847_p11 }
 0x38e   : > { %p3853_p1 = pnand %p3852_p2, %p3848_p12 }
 0x390   : > { %3856 = shalt.err (!%p3853_p1)
}
 0x391   : > { %3066 = dma.vmem_to_hbm [thread:$0]  (%p5668_p13), %s5290_s30, 128, %s5287_s3, %s2055_s21  }
 0x392   : > { %s3857_s11 = scalar_lea.vmem %s5299_s13, 128  ;;  %s4112_s16 = smov [#allocation35]  }
 0x393   : > { %p3858_p3 = scmp.ne.s32.totalorder %s5299_s13, %s3857_s11  ;;  %s3861_s22 = sshll.u32 %s4112_s16, 4  ;;  %s3862_s22 = int_to_ptr.vmem [resolvable:$false] %s3861_s22 }
 0x394   : > { %s3863_s6 = scalar_lea.vmem %s3862_s22, 256  ;;  %p3864_p8 = scmp.lt.s32.totalorder %s5299_s13, %s3862_s22 }
 0x395   : > { %p3859_p5 = pnand %p3858_p3, %p5668_p13  ;;  %p3865_p10 = scmp.lt.s32.totalorder %s3863_s6, %s3857_s11 }
 0x397   : > { %p3860_p7 = pneg %p3859_p5  ;;  %p3866_p9 = por %p3865_p10, %p3864_p8 }
 0x399   : > { %p3867_p6 = pnand %p3866_p9, %p3860_p7 }
 0x39b   : > { %3870 = shalt.err (!%p3867_p6)
}
 0x39c   : > { %s3871_s18 = scalar_lea.hbm %s5296_s2, 128  ;;  %s3875_s0 = scalar_lea.hbm %s5678_s1, 512 }
 0x39d   : > { %p3872_p11 = scmp.ne.s32.totalorder %s5296_s2, %s3871_s18  ;;  %p3876_p4 = scmp.lt.s32.totalorder %s5296_s2, %s5678_s1 }
 0x39e   : > { %p3877_p2 = scmp.lt.s32.totalorder %s3875_s0, %s3871_s18 }
 0x39f   : > { %p3873_p12 = pnand %p3872_p11, %p5668_p13 }
 0x3a0   : > { %p3878_p1 = por %p3877_p2, %p3876_p4 }
 0x3a1   : > { %p3874_p0 = pneg %p3873_p12 }
 0x3a3   : > { %p3879_p3 = pnand %p3878_p1, %p3874_p0 }
 0x3a5   : > { %3882 = shalt.err (!%p3879_p3)
}
 0x3a6   : > { %s5682_s12 = scalar_lea.sflag [#allocation34], %s4764_s29  ;;  %s3883_s4 = scalar_lea.vmem %s5312_s15, 128 }
 0x3a7   : > { %3065 = dma.vmem_to_hbm [thread:$0]  (%p5668_p13), %s5299_s13, 128, %s5296_s2, %s5682_s12  }
 0x3a8   : > { %p3884_p5 = scmp.ne.s32.totalorder %s5312_s15, %s3883_s4  ;;  %s4113_s11 = smov [#allocation38]  }
 0x3a9   : > { %s3887_s16 = sshll.u32 %s4113_s11, 4  ;;  %s3888_s16 = int_to_ptr.vmem [resolvable:$false] %s3887_s16 }
 0x3aa   : > { %p3885_p7 = pnand %p3884_p5, %p5668_p13  ;;  %s3889_s22 = scalar_lea.vmem %s3888_s16, 256 }
 0x3ab   : > { %p3890_p10 = scmp.lt.s32.totalorder %s5312_s15, %s3888_s16  ;;  %p3891_p9 = scmp.lt.s32.totalorder %s3889_s22, %s3883_s4 }
 0x3ac   : > { %p3886_p8 = pneg %p3885_p7 }
 0x3ad   : > { %p3892_p6 = por %p3891_p9, %p3890_p10 }
 0x3af   : > { %p3893_p11 = pnand %p3892_p6, %p3886_p8 }
 0x3b1   : > { %3896 = shalt.err (!%p3893_p11)
}
 0x3b2   : > { %s3897_s6 = scalar_lea.hbm %s5309_s28, 128  ;;  %s3901_s18 = scalar_lea.hbm %s5681_s14, 512 }
 0x3b3   : > { %p3898_p12 = scmp.ne.s32.totalorder %s5309_s28, %s3897_s6  ;;  %p3902_p2 = scmp.lt.s32.totalorder %s5309_s28, %s5681_s14 }
 0x3b4   : > { %p3903_p1 = scmp.lt.s32.totalorder %s3901_s18, %s3897_s6 }
 0x3b5   : > { %p3899_p0 = pnand %p3898_p12, %p5668_p13 }
 0x3b6   : > { %p3904_p3 = por %p3903_p1, %p3902_p2 }
 0x3b7   : > { %p3900_p4 = pneg %p3899_p0 }
 0x3b9   : > { %p3905_p5 = pnand %p3904_p3, %p3900_p4 }
 0x3bb   : > { %3908 = shalt.err (!%p3905_p5)
}
 0x3bc   : > { %3067 = dma.vmem_to_hbm [thread:$0]  (%p5668_p13), %s5312_s15, 128, %s5309_s28, %s2055_s21  }
 0x3bd PF: > { %s5683_s0 = sld [smem:[#allocation65_spill]] }
 0x3be   : > { %s5684_s8 = sld [smem:[#allocation60_spill]] }
 0x3bf   : > { %s5685_s27 = sld [smem:[#allocation76_spill]] }
 0x3c3   : > { %p3099_p7 = scmp.ge.s32.totalorder %s5683_s0, 2 }
 0x3c4   : > { %s2187_s12 = sand.u32 1, %s5684_s8  }
 0x3c5   : > { %p5686_p8 = scmp.ne.s32.totalorder %s5685_s27, 0  ;;  %s2188_s4 = scalar_lea.sflag [#allocation4], %s2187_s12 }
 0x3c7   : > { %p3078_p10 = pnand %p3099_p7, %p5686_p8 }
 0x3c9   : > { %p3079_p9 = pneg %p3078_p10 }
 0x3cb   : > { %4010 = dma.done.wait (%p3079_p9), %s2188_s4, 128  }
 0x3cc   : > { %4012 = vsyncadd (%p3079_p9), %s2188_s4, 4294967168  ;;  %s5687_s11 = sadd.s32 4294967294, %s5683_s0  }
 0x3cd   : > { %s2196_s5 = sand.u32 1, %s5687_s11  }
 0x3ce   : > { %s2197_s16 = scalar_lea.sflag [#allocation34], %s2196_s5 }
 0x3cf   : > { %4014 = dma.done.wait (%p3079_p9), %s2197_s16, 256  }
 0x3d0   : > { %4016 = vsyncadd (%p3079_p9), %s2197_s16, 4294967040  ;;  %s2215_s29 = scalar_lea.sflag [#allocation37], %s2196_s5 }
 0x3d1   : > { %4018 = dma.done.wait (%p3079_p9), %s2215_s29, 256  }
 0x3d2   : > { %4020 = vsyncadd (%p3079_p9), %s2215_s29, 4294967040  ;;  %s2233_s15 = scalar_lea.sflag [#allocation40], %s2196_s5 }
 0x3d3   : > { %4022 = dma.done.wait (%p3079_p9), %s2233_s15, 256  }
 0x3d4   : > { %4024 = vsyncadd (%p3079_p9), %s2233_s15, 4294967040  ;;  %s79_s6 = sadd.s32 1, %s5683_s0   ;;  %s5689_s27 = sld [smem:[#allocation57_spill]] }
 0x3d5   : > { %p5388_p13 = scmp.ge.s32.totalorder %s79_s6, 6   ;;  %s5690_s21 = sld [smem:[#allocation77_spill]] }
 0x3d6   : > { %s5691_s22 = sld [smem:[#allocation58_spill]]  ;;  %s5700_s3 = smov %s4039_s7 }
 0x3d7   : > { %s5692_s8 = sld [smem:[#allocation59_spill]]  ;;  %s5703_s0 = smov %s4063_s9 }
 0x3d8   : > { %s5693_s4 = sld [smem:[#allocation72_spill]]  ;;  %s5705_s2 = smov %s4079_s10 }
 0x3d9   : > { %s5694_s29 = sld [smem:[#allocation61_spill]] }
 0x3da   : > { %s5695_s13 = sld [smem:[#allocation70_spill]] }
 0x3db   : > { %s5696_s30 = sld [smem:[#allocation64_spill]]  ;;  %s5701_s7 = smov %s5690_s21 }
 0x3dc   : > { %s5697_s5 = sld [smem:[#allocation67_spill]]  ;;  %s5702_s28 = smov %s5691_s22 }
 0x3dd   : > { %s5698_s18 = sld [smem:[#allocation68_spill]] }
 0x3df   :  { %78 = sbr.rel (!%p5388_p13) target bundleno = 62 (0x3e), region = 460 }
 0x3e0   : > { %s5704_s9 = smov %s5695_s13 }
 0x3e3   : > { %s5706_s10 = smov %s5698_s18 }
 0x3e4   :  { %2247 = vsyncpa [#allocation3], 1 }
 0x3e5   :  { %2249 = vsyncpa [#allocation3 + $0x1], 1 }
 0x3e6   :  { %2250 = vsyncpa [#allocation6], 1 }
 0x3e7   :  { %2252 = vsyncpa [#allocation6 + $0x1], 1 }
 0x3e8   :  { %2253 = vsyncpa [#allocation9], 1 }
 0x3e9   :  { %2255 = vsyncpa [#allocation9 + $0x1], 1 }
 0x3ea   :  { %2256 = vsyncpa [#allocation12], 1 }
 0x3eb   :  { %2258 = vsyncpa [#allocation12 + $0x1], 1 }
 0x3ec   :  { %2259 = vsyncpa [#allocation15], 1 }
 0x3ed   :  { %2261 = vsyncpa [#allocation15 + $0x1], 1 }
 0x3ee   :  { %2262 = vsyncpa [#allocation18], 1 }
 0x3ef   :  { %2264 = vsyncpa [#allocation18 + $0x1], 1 }
 0x3f0   :  { %2265 = vsyncpa [#allocation21], 1 }
 0x3f1   :  { %2267 = vsyncpa [#allocation21 + $0x1], 1 }
 0x3f2   :  { %2268 = vsyncpa [#allocation24], 1 }
 0x3f3   :  { %2270 = vsyncpa [#allocation24 + $0x1], 1 }
 0x3f4   :  { %2271 = vsyncpa [#allocation27], 1 }
 0x3f5   :  { %2273 = vsyncpa [#allocation27 + $0x1], 1 }
 0x3f6   :  { %2274 = vsyncpa [#allocation30], 1 }
 0x3f7   :  { %2276 = vsyncpa [#allocation30 + $0x1], 1 }
 0x3f8   :  { %2277 = vsyncpa [#allocation4], 1 }
 0x3f9   :  { %2279 = vsyncpa [#allocation4 + $0x1], 1 }
 0x3fa   :  { %2280 = vsyncpa [#allocation34], 1 }
 0x3fb   :  { %2282 = vsyncpa [#allocation34 + $0x1], 1 }
 0x3fc   :  { %2283 = vsyncpa [#allocation37], 1 }
 0x3fd   :  { %2285 = vsyncpa [#allocation37 + $0x1], 1 }
 0x3fe   :  { %2286 = vsyncpa [#allocation40], 1 }
 0x3ff   :  { %2288 = vsyncpa [#allocation40 + $0x1], 1 }

</bundles_post_ra>
